<compile_context>
chip_gen: v7x
topology: tpu7x:2x2x1
jax: 0.10.0
libtpu: 0.0.40
codegen_flags: <defaults>
</compile_context>

<pallas_src>
import functools

import jax
import jax.numpy as jnp
from jax import lax
from jax.experimental import pallas as pl
from jax.experimental.pallas import tpu as pltpu

LN_EPS = 1e-5


def _layer_norm(x, gamma, beta):
    # two-pass statistics (numerically safe for large post-residual magnitudes)
    mu = jnp.mean(x, axis=-1, keepdims=True)
    xc = x - mu
    var = jnp.mean(xc * xc, axis=-1, keepdims=True)
    return xc * lax.rsqrt(var + LN_EPS) * gamma + beta


def encoder_kernel(src_ref, mask_ref, we_ref, be_ref,
                   wq_ref, bq_ref, wk_ref, bk_ref, wv_ref, bv_ref,
                   wo_ref, bo_ref, ln1g_ref, ln1b_ref,
                   w1_ref, b1_ref, w2_ref, b2_ref, ln2g_ref, ln2b_ref,
                   out_ref, h_ref, ctx_ref, *, n_heads, hd_pad, scale):
    """Grid = (batch_block, layer). One encoder layer per step; h carried in VMEM."""
    layer = pl.program_id(1)
    n_layers = pl.num_programs(1)

    b_blk, S, d_in = src_ref.shape
    T, H = h_ref.shape                     # T = b_blk * S (rows flattened for matmuls)
    bf16 = jnp.bfloat16
    inv_scale = 1.0 / scale

    # ---- expand: Linear(input_dim -> hid_dim), only on the first layer step ----
    @pl.when(layer == 0)
    def _init():
        x = src_ref[...].reshape(T, d_in)              # already bf16
        h_ref[...] = (jnp.dot(x, we_ref[...], preferred_element_type=jnp.float32)
                      + be_ref[...])

    h = h_ref[...]                                     # (T, H) f32, carried across layers
    hb = h.astype(bf16)

    # ---- fused full-width Q/K/V projections (lane-padded, head-major layout) ----
    qb = ((jnp.dot(hb, wq_ref[...], preferred_element_type=jnp.float32) + bq_ref[...])
          * inv_scale).astype(bf16)                    # scale folded into q (cheap, once)
    kb = (jnp.dot(hb, wk_ref[...], preferred_element_type=jnp.float32)
          + bk_ref[...]).astype(bf16)
    vb = (jnp.dot(hb, wv_ref[...], preferred_element_type=jnp.float32)
          + bv_ref[...]).astype(bf16)

    # ---- per-head scaled dot-product attention; context written at 128-lane offsets ----
    for n in range(n_heads):                           # static, small
        lo = n * hd_pad
        qn = qb[:, lo:lo + hd_pad].reshape(b_blk, S, hd_pad)
        kn = kb[:, lo:lo + hd_pad].reshape(b_blk, S, hd_pad)
        vn = vb[:, lo:lo + hd_pad].reshape(b_blk, S, hd_pad)

        e = jnp.einsum('bqd,bkd->bqk', qn, kn, preferred_element_type=jnp.float32)
        m = jnp.max(e, axis=-1, keepdims=True)
        p = jnp.exp(e - m)
        p = p * pl.reciprocal(jnp.sum(p, axis=-1, keepdims=True), approx=True)

        cn = jnp.einsum('bqk,bkd->bqd', p.astype(bf16), vn,
                        preferred_element_type=jnp.float32)     # (b_blk, S, hd_pad)
        ctx_ref[:, lo:lo + hd_pad] = cn.reshape(T, hd_pad).astype(bf16)

    # single full-width output projection (padded rows of W_o are zero)
    attn = (jnp.dot(ctx_ref[...], wo_ref[...], preferred_element_type=jnp.float32)
            + bo_ref[...])

    # residual + LayerNorm (dropout == identity in eval)
    y = _layer_norm(h + attn, ln1g_ref[...], ln1b_ref[...])

    # ---- position-wise feed-forward (hidden kept bf16 after ReLU) ----
    f = jnp.dot(y.astype(bf16), w1_ref[...], preferred_element_type=jnp.float32) + b1_ref[...]
    f = jnp.maximum(f, 0.0).astype(bf16)
    f = jnp.dot(f, w2_ref[...], preferred_element_type=jnp.float32) + b2_ref[...]

    h_new = _layer_norm(y + f, ln2g_ref[...], ln2b_ref[...])
    h_ref[...] = h_new

    @pl.when(layer == n_layers - 1)
    def _store():
        # einsum('ijk,ij->ijk', src, src_mask) fused into the final store
        out_ref[...] = (h_new.reshape(b_blk, S, H) * mask_ref[...]).astype(out_ref.dtype)


# -------------------------- host-side configuration helpers --------------------------
def _tpu_vmem_capacity_bytes():
    try:
        return int(pltpu.get_tpu_info().vmem_capacity_bytes)
    except Exception:
        return 64 << 20          # conservative fallback (covers v7x's 64 MiB)


def _num_tensorcores():
    try:
        info = pltpu.get_tpu_info()
        for attr in ("num_cores", "core_count", "tensorcores_per_chip", "num_tensorcores"):
            v = getattr(info, attr, None)
            if v:
                return int(v)
    except Exception:
        pass
    return 1


def _vmem_need_bytes(b_blk, S, d_in, H, Hp, PF):
    """Rough per-step VMEM need (double-buffered IO/weights + live activations)."""
    bf, f32 = 2, 4
    T = b_blk * S
    layer_w = (4 * H * Hp + 2 * H * PF) * bf + (3 * Hp + 6 * H + PF) * f32
    const_w = (d_in * H) * bf + H * f32
    io = (T * d_in) * bf + T * f32 + (T * H) * f32          # src + mask + out blocks
    scratch = T * H * f32 + T * Hp * bf                      # h + ctx scratches
    act = (3 * T * Hp) * bf + 3 * b_blk * S * S * f32 + 3 * T * H * f32 + T * PF * (f32 + bf)
    need = 2 * (layer_w + const_w + io) + scratch + act
    return int(need * 1.3) + (2 << 20)                       # compiler-temp headroom


def _auto_config(B, S, d_in, H, Hp, PF, requested_b_blk=None):
    cap = _tpu_vmem_capacity_bytes()
    budget = max(16 << 20, int(cap * 0.85))
    # On multi-TensorCore chips (v7x) keep >= 2 batch blocks so the "parallel" axis
    # actually shards; on 1-TC chips keep one block (no redundant weight streaming).
    min_blocks = 2 if (_num_tensorcores() >= 2 and B >= 2) else 1

    if requested_b_blk is not None:
        need = _vmem_need_bytes(requested_b_blk, S, d_in, H, Hp, PF)
        return requested_b_blk, min(max(need, 32 << 20), budget)

    divisors = sorted([d for d in range(1, B + 1) if B % d == 0], reverse=True)
    cands = [d for d in divisors if B // d >= min_blocks] or [min(divisors)]
    for b in cands:
        need = _vmem_need_bytes(b, S, d_in, H, Hp, PF)
        if need <= budget:
            return b, min(max(need, 32 << 20), budget)
    # Nothing fits the budget even at the smallest block: best effort with full budget.
    # TODO(synk): key-tiled (flash) attention / PF-tiled FFN for very long S or wide PF.
    return cands[-1], budget


def sees_encoder_forward(src, src_mask, params, *, n_heads, b_blk=None):
    """Host wrapper: weight re-layout + pallas_call. Returns (src_out, src_mask)."""
    B, S, d_in = src.shape
    H = params["we"].shape[1]
    L = params["wq"].shape[0]
    PF = params["w1"].shape[2]
    assert H % n_heads == 0
    hd = H // n_heads
    hd_pad = hd if hd % 128 == 0 else ((hd + 127) // 128) * 128   # clean 128-lane slices
    Hp = n_heads * hd_pad

    b_blk, vmem_limit = _auto_config(B, S, d_in, H, Hp, PF, b_blk)
    assert B % b_blk == 0

    bf16, f32 = jnp.bfloat16, jnp.float32

    # -------- host-side weight re-layout (zero in-kernel relayout) --------
    def pad_cols(w):          # (L, H, nh*hd) -> (L, H, nh*hd_pad), zero pad per head
        w = w.reshape(L, H, n_heads, hd)
        if hd_pad != hd:
            w = jnp.concatenate(
                [w, jnp.zeros((L, H, n_heads, hd_pad - hd), w.dtype)], axis=-1)
        return w.reshape(L, H, Hp).astype(bf16)

    def pad_bias(b):          # (L, 1, nh*hd) -> (L, 1, nh*hd_pad)
        b = b.reshape(L, 1, n_heads, hd)
        if hd_pad != hd:
            b = jnp.concatenate(
                [b, jnp.zeros((L, 1, n_heads, hd_pad - hd), b.dtype)], axis=-1)
        return b.reshape(L, 1, Hp).astype(f32)

    def pad_rows(w):          # W_o: (L, nh*hd, H) -> (L, nh*hd_pad, H), zero pad rows
        w = w.reshape(L, n_heads, hd, H)
        if hd_pad != hd:
            w = jnp.concatenate(
                [w, jnp.zeros((L, n_heads, hd_pad - hd, H), w.dtype)], axis=2)
        return w.reshape(L, Hp, H).astype(bf16)

    weights = dict(
        we=params["we"].astype(bf16), be=params["be"].astype(f32),
        wq=pad_cols(params["wq"]), bq=pad_bias(params["bq"]),
        wk=pad_cols(params["wk"]), bk=pad_bias(params["bk"]),
        wv=pad_cols(params["wv"]), bv=pad_bias(params["bv"]),
        wo=pad_rows(params["wo"]), bo=params["bo"].astype(f32),
        ln1g=params["ln1g"].astype(f32), ln1b=params["ln1b"].astype(f32),
        w1=params["w1"].astype(bf16), b1=params["b1"].astype(f32),
        w2=params["w2"].astype(bf16), b2=params["b2"].astype(f32),
        ln2g=params["ln2g"].astype(f32), ln2b=params["ln2b"].astype(f32),
    )
    names = ["we", "be", "wq", "bq", "wk", "bk", "wv", "bv",
             "wo", "bo", "ln1g", "ln1b", "w1", "b1", "w2", "b2", "ln2g", "ln2b"]
    w_list = [weights[n] for n in names]

    def const_spec(arr):      # constant-index weights (DMA'd once per batch block)
        nd = arr.ndim
        return pl.BlockSpec(arr.shape, lambda b, l, _nd=nd: (0,) * _nd)

    def per_layer_spec(arr):  # stream one layer's block per grid step; layer axis squeezed
        nd = arr.ndim
        return pl.BlockSpec((None,) + tuple(arr.shape[1:]),
                            lambda b, l, _nd=nd: (l,) + (0,) * (_nd - 1))

    w_specs = [const_spec(weights["we"]), const_spec(weights["be"])] + \
              [per_layer_spec(weights[n]) for n in names[2:]]

    T = b_blk * S
    src_bf16 = src.astype(bf16)                         # halve input DMA
    mask3 = src_mask.astype(f32)[:, :, None]            # (B, S, 1), applied in-kernel

    out = pl.pallas_call(
        functools.partial(encoder_kernel, n_heads=n_heads, hd_pad=hd_pad,
                          scale=float(hd) ** 0.5),
        out_shape=jax.ShapeDtypeStruct((B, S, H), jnp.float32),
        grid_spec=pltpu.PrefetchScalarGridSpec(
            num_scalar_prefetch=0,
            grid=(B // b_blk, L),
            in_specs=[pl.BlockSpec((b_blk, S, d_in), lambda b, l: (b, 0, 0)),
                      pl.BlockSpec((b_blk, S, 1), lambda b, l: (b, 0, 0))] + w_specs,
            out_specs=pl.BlockSpec((b_blk, S, H), lambda b, l: (b, 0, 0)),
            scratch_shapes=[pltpu.VMEM((T, H), jnp.float32),     # carried activations
                            pltpu.VMEM((T, Hp), jnp.bfloat16)],  # per-layer head contexts
        ),
        compiler_params=pltpu.CompilerParams(
            dimension_semantics=("parallel", "arbitrary"),
            vmem_limit_bytes=int(vmem_limit),
        ),
    )(src_bf16, mask3, *w_list)

    return out, src_mask


# ---------------- pure-JAX reference (for correctness check) ----------------
def reference_forward(src, src_mask, params, n_heads):
    # emulate the kernel's bf16 weight storage so only activation rounding differs
    r = lambda w: w.astype(jnp.bfloat16).astype(jnp.float32)
    h = src @ r(params["we"]) + params["be"]
    L = params["wq"].shape[0]
    H = params["wq"].shape[2]
    hd = H // n_heads
    scale = hd ** 0.5
    for l in range(L):
        q = h @ r(params["wq"][l]) + params["bq"][l]
        k = h @ r(params["wk"][l]) + params["bk"][l]
        v = h @ r(params["wv"][l]) + params["bv"][l]
        B, S, _ = q.shape
        qh = q.reshape(B, S, n_heads, hd).transpose(0, 2, 1, 3)
        kh = k.reshape(B, S, n_heads, hd).transpose(0, 2, 1, 3)
        vh = v.reshape(B, S, n_heads, hd).transpose(0, 2, 1, 3)
        energy = jnp.einsum("bhqd,bhkd->bhqk", qh, kh) / scale
        attn = jax.nn.softmax(energy, axis=-1)
        o = jnp.einsum("bhqk,bhkd->bhqd", attn, vh).transpose(0, 2, 1, 3).reshape(B, S, H)
        o = o @ r(params["wo"][l]) + params["bo"][l]
        y = h + o
        mu = y.mean(-1, keepdims=True)
        var = ((y - mu) ** 2).mean(-1, keepdims=True)
        y = (y - mu) / jnp.sqrt(var + LN_EPS) * params["ln1g"][l] + params["ln1b"][l]
        f = jnp.maximum(y @ r(params["w1"][l]) + params["b1"][l], 0.0)
        f = f @ r(params["w2"][l]) + params["b2"][l]
        z = y + f
        mu = z.mean(-1, keepdims=True)
        var = ((z - mu) ** 2).mean(-1, keepdims=True)
        h = (z - mu) / jnp.sqrt(var + LN_EPS) * params["ln2g"][l] + params["ln2b"][l]
    return h * src_mask[:, :, None]


def init_params(key, d_in, hid, n_layers, pf):
    ks = jax.random.split(key, 14)
    w = lambda k, shape: jax.random.normal(k, shape, jnp.float32) * 0.1
    return {
        "we": w(ks[0], (d_in, hid)),          "be": w(ks[1], (1, hid)),
        "wq": w(ks[2], (n_layers, hid, hid)), "bq": w(ks[3], (n_layers, 1, hid)),
        "wk": w(ks[4], (n_layers, hid, hid)), "bk": w(ks[5], (n_layers, 1, hid)),
        "wv": w(ks[6], (n_layers, hid, hid)), "bv": w(ks[7], (n_layers, 1, hid)),
        "wo": w(ks[8], (n_layers, hid, hid)), "bo": w(ks[9], (n_layers, 1, hid)),
        "ln1g": jnp.ones((n_layers, 1, hid), jnp.float32),
        "ln1b": jnp.zeros((n_layers, 1, hid), jnp.float32),
        "w1": w(ks[10], (n_layers, hid, pf)), "b1": w(ks[11], (n_layers, 1, pf)),
        "w2": w(ks[12], (n_layers, pf, hid)), "b2": w(ks[13], (n_layers, 1, hid)),
        "ln2g": jnp.ones((n_layers, 1, hid), jnp.float32),
        "ln2b": jnp.zeros((n_layers, 1, hid), jnp.float32),
    }


if __name__ == "__main__":
    B, S, D_IN, HID, N_LAYERS, N_HEADS, PF_DIM, WALK_LEN, N_NODES = 2, 8, 4, 32, 2, 4, 64, 5, 10

    key = jax.random.PRNGKey(0)
    kp, k1, k2, k3, k4 = jax.random.split(key, 5)

    params = init_params(kp, D_IN, HID, N_LAYERS, PF_DIM)
    src = jax.random.normal(k1, (B, S, D_IN), jnp.float32)
    src_mask = (jax.random.uniform(k2, (B, S)) > 0.3).astype(jnp.float32)
    walk = jax.random.randint(k3, (B, WALK_LEN), 0, N_NODES)            # unused by forward output
    walk_src = jax.random.normal(k4, (B, WALK_LEN, D_IN), jnp.float32)  # unused by forward output

    out, mask_out = sees_encoder_forward(src, src_mask, params, n_heads=N_HEADS)
    jax.block_until_ready(out)

    ref = reference_forward(src, src_mask, params, N_HEADS)
    assert out.shape == (B, S, HID) and mask_out.shape == (B, S)
    max_err = float(jnp.max(jnp.abs(out - ref)))
    assert jnp.allclose(out, ref, atol=3e-2, rtol=3e-2), f"mismatch vs reference (max abs err {max_err})"
    print("KERNEL_OK")
</pallas_src>

<mosaic_0001>
module attributes {stable_mosaic.version = 11 : i64} {
  func.func @encoder_kernel(%arg0: i32, %arg1: i32, %arg2: memref<2x8x4xbf16, #tpu.memory_space<vmem>>, %arg3: memref<2x8x1xf32, #tpu.memory_space<vmem>>, %arg4: memref<4x32xbf16, #tpu.memory_space<vmem>>, %arg5: memref<1x32xf32, #tpu.memory_space<vmem>>, %arg6: memref<1x32x512xbf16, #tpu.memory_space<vmem>>, %arg7: memref<1x1x512xf32, #tpu.memory_space<vmem>>, %arg8: memref<1x32x512xbf16, #tpu.memory_space<vmem>>, %arg9: memref<1x1x512xf32, #tpu.memory_space<vmem>>, %arg10: memref<1x32x512xbf16, #tpu.memory_space<vmem>>, %arg11: memref<1x1x512xf32, #tpu.memory_space<vmem>>, %arg12: memref<1x512x32xbf16, #tpu.memory_space<vmem>>, %arg13: memref<1x1x32xf32, #tpu.memory_space<vmem>>, %arg14: memref<1x1x32xf32, #tpu.memory_space<vmem>>, %arg15: memref<1x1x32xf32, #tpu.memory_space<vmem>>, %arg16: memref<1x32x64xbf16, #tpu.memory_space<vmem>>, %arg17: memref<1x1x64xf32, #tpu.memory_space<vmem>>, %arg18: memref<1x64x32xbf16, #tpu.memory_space<vmem>>, %arg19: memref<1x1x32xf32, #tpu.memory_space<vmem>>, %arg20: memref<1x1x32xf32, #tpu.memory_space<vmem>>, %arg21: memref<1x1x32xf32, #tpu.memory_space<vmem>>, %arg22: memref<2x8x32xf32, #tpu.memory_space<vmem>>, %arg23: memref<16x32xf32, #tpu.memory_space<vmem>>, %arg24: memref<16x512xbf16, #tpu.memory_space<vmem>>) attributes {dimension_semantics = [#tpu.dimension_semantics<parallel>, #tpu.dimension_semantics<arbitrary>], iteration_bounds = array<i64: 1, 2>, scalar_prefetch = 0 : i64, scratch_operands = 2 : i64, tpu.core_type = #tpu.core_type<tc>, window_params = [{transform_indices = @transform_0, window_bounds = array<i64: 2, 8, 4>}, {transform_indices = @transform_1, window_bounds = array<i64: 2, 8, 1>}, {pipeline_mode = #tpu.pipeline_mode<synchronous>, transform_indices = @transform_2, window_bounds = array<i64: 4, 32>}, {pipeline_mode = #tpu.pipeline_mode<synchronous>, transform_indices = @transform_3, window_bounds = array<i64: 1, 32>}, {transform_indices = @transform_4, window_bounds = array<i64: 1, 32, 512>}, {transform_indices = @transform_5, window_bounds = array<i64: 1, 1, 512>}, {transform_indices = @transform_6, window_bounds = array<i64: 1, 32, 512>}, {transform_indices = @transform_7, window_bounds = array<i64: 1, 1, 512>}, {transform_indices = @transform_8, window_bounds = array<i64: 1, 32, 512>}, {transform_indices = @transform_9, window_bounds = array<i64: 1, 1, 512>}, {transform_indices = @transform_10, window_bounds = array<i64: 1, 512, 32>}, {transform_indices = @transform_11, window_bounds = array<i64: 1, 1, 32>}, {transform_indices = @transform_12, window_bounds = array<i64: 1, 1, 32>}, {transform_indices = @transform_13, window_bounds = array<i64: 1, 1, 32>}, {transform_indices = @transform_14, window_bounds = array<i64: 1, 32, 64>}, {transform_indices = @transform_15, window_bounds = array<i64: 1, 1, 64>}, {transform_indices = @transform_16, window_bounds = array<i64: 1, 64, 32>}, {transform_indices = @transform_17, window_bounds = array<i64: 1, 1, 32>}, {transform_indices = @transform_18, window_bounds = array<i64: 1, 1, 32>}, {transform_indices = @transform_19, window_bounds = array<i64: 1, 1, 32>}, {transform_indices = @transform_20, window_bounds = array<i64: 2, 8, 32>}]} {
    %c0_i32 = arith.constant 0 : i32
    %0 = arith.cmpi eq, %arg1, %c0_i32 : i32
    %1 = arith.extui %0 : i1 to i32
    %c0_i32_0 = arith.constant 0 : i32
    %2 = arith.cmpi ne, %1, %c0_i32_0 : i32
    scf.if %2 {
      %c0_93 = arith.constant 0 : index
      %c0_94 = arith.constant 0 : index
      %c0_95 = arith.constant 0 : index
      %199 = vector.load %arg2[%c0_93, %c0_94, %c0_95] : memref<2x8x4xbf16, #tpu.memory_space<vmem>>, vector<2x8x4xbf16>
      %200 = vector.shape_cast %199 : vector<2x8x4xbf16> to vector<16x4xbf16>
      %c0_96 = arith.constant 0 : index
      %c0_97 = arith.constant 0 : index
      %201 = vector.load %arg4[%c0_96, %c0_97] : memref<4x32xbf16, #tpu.memory_space<vmem>>, vector<4x32xbf16>
      %cst_98 = arith.constant dense<0.000000e+00> : vector<16x32xf32>
      %202 = tpu.matmul %200, %201, %cst_98 {dimension_numbers = #tpu.dot_dimension_numbers<[1], [0], [0], [1], [0, 0, 1, 1], [], []>} : vector<16x4xbf16>, vector<4x32xbf16>, vector<16x32xf32> -> vector<16x32xf32>
      %c0_99 = arith.constant 0 : index
      %c0_100 = arith.constant 0 : index
      %203 = vector.load %arg5[%c0_99, %c0_100] : memref<1x32xf32, #tpu.memory_space<vmem>>, vector<1x32xf32>
      %204 = vector.broadcast %203 : vector<1x32xf32> to vector<16x32xf32>
      %205 = arith.addf %202, %204 : vector<16x32xf32>
      %c0_101 = arith.constant 0 : index
      %c0_102 = arith.constant 0 : index
      %206 = vector.load %arg23[%c0_101, %c0_102] : memref<16x32xf32, #tpu.memory_space<vmem>>, vector<16x32xf32>
      tpu.vector_store %arg23[%c0_101, %c0_102], %205 {strides = array<i32>} : memref<16x32xf32, #tpu.memory_space<vmem>>, vector<16x32xf32>,
    } else {
    }
    %c0 = arith.constant 0 : index
    %c0_1 = arith.constant 0 : index
    %3 = vector.load %arg23[%c0, %c0_1] : memref<16x32xf32, #tpu.memory_space<vmem>>, vector<16x32xf32>
    %4 = arith.truncf %3 : vector<16x32xf32> to vector<16x32xbf16>
    %c0_2 = arith.constant 0 : index
    %c0_3 = arith.constant 0 : index
    %c0_4 = arith.constant 0 : index
    %5 = vector.load %arg6[%c0_2, %c0_3, %c0_4] : memref<1x32x512xbf16, #tpu.memory_space<vmem>>, vector<1x32x512xbf16>
    %6 = vector.shape_cast %5 : vector<1x32x512xbf16> to vector<32x512xbf16>
    %cst = arith.constant dense<0.000000e+00> : vector<16x512xf32>
    %7 = tpu.matmul %4, %6, %cst {dimension_numbers = #tpu.dot_dimension_numbers<[1], [0], [0], [1], [0, 0, 1, 1], [], []>} : vector<16x32xbf16>, vector<32x512xbf16>, vector<16x512xf32> -> vector<16x512xf32>
    %c0_5 = arith.constant 0 : index
    %c0_6 = arith.constant 0 : index
    %c0_7 = arith.constant 0 : index
    %8 = vector.load %arg7[%c0_5, %c0_6, %c0_7] : memref<1x1x512xf32, #tpu.memory_space<vmem>>, vector<1x1x512xf32>
    %9 = vector.shape_cast %8 : vector<1x1x512xf32> to vector<1x512xf32>
    %10 = vector.broadcast %9 : vector<1x512xf32> to vector<16x512xf32>
    %11 = arith.addf %7, %10 : vector<16x512xf32>
    %cst_8 = arith.constant 0.353553385 : f32
    %12 = vector.broadcast %cst_8 : f32 to vector<16x512xf32>
    %13 = arith.mulf %11, %12 : vector<16x512xf32>
    %14 = arith.truncf %13 : vector<16x512xf32> to vector<16x512xbf16>
    %c0_9 = arith.constant 0 : index
    %c0_10 = arith.constant 0 : index
    %c0_11 = arith.constant 0 : index
    %15 = vector.load %arg8[%c0_9, %c0_10, %c0_11] : memref<1x32x512xbf16, #tpu.memory_space<vmem>>, vector<1x32x512xbf16>
    %16 = vector.shape_cast %15 : vector<1x32x512xbf16> to vector<32x512xbf16>
    %cst_12 = arith.constant dense<0.000000e+00> : vector<16x512xf32>
    %17 = tpu.matmul %4, %16, %cst_12 {dimension_numbers = #tpu.dot_dimension_numbers<[1], [0], [0], [1], [0, 0, 1, 1], [], []>} : vector<16x32xbf16>, vector<32x512xbf16>, vector<16x512xf32> -> vector<16x512xf32>
    %c0_13 = arith.constant 0 : index
    %c0_14 = arith.constant 0 : index
    %c0_15 = arith.constant 0 : index
    %18 = vector.load %arg9[%c0_13, %c0_14, %c0_15] : memref<1x1x512xf32, #tpu.memory_space<vmem>>, vector<1x1x512xf32>
    %19 = vector.shape_cast %18 : vector<1x1x512xf32> to vector<1x512xf32>
    %20 = vector.broadcast %19 : vector<1x512xf32> to vector<16x512xf32>
    %21 = arith.addf %17, %20 : vector<16x512xf32>
    %22 = arith.truncf %21 : vector<16x512xf32> to vector<16x512xbf16>
    %c0_16 = arith.constant 0 : index
    %c0_17 = arith.constant 0 : index
    %c0_18 = arith.constant 0 : index
    %23 = vector.load %arg10[%c0_16, %c0_17, %c0_18] : memref<1x32x512xbf16, #tpu.memory_space<vmem>>, vector<1x32x512xbf16>
    %24 = vector.shape_cast %23 : vector<1x32x512xbf16> to vector<32x512xbf16>
    %cst_19 = arith.constant dense<0.000000e+00> : vector<16x512xf32>
    %25 = tpu.matmul %4, %24, %cst_19 {dimension_numbers = #tpu.dot_dimension_numbers<[1], [0], [0], [1], [0, 0, 1, 1], [], []>} : vector<16x32xbf16>, vector<32x512xbf16>, vector<16x512xf32> -> vector<16x512xf32>
    %c0_20 = arith.constant 0 : index
    %c0_21 = arith.constant 0 : index
    %c0_22 = arith.constant 0 : index
    %26 = vector.load %arg11[%c0_20, %c0_21, %c0_22] : memref<1x1x512xf32, #tpu.memory_space<vmem>>, vector<1x1x512xf32>
    %27 = vector.shape_cast %26 : vector<1x1x512xf32> to vector<1x512xf32>
    %28 = vector.broadcast %27 : vector<1x512xf32> to vector<16x512xf32>
    %29 = arith.addf %25, %28 : vector<16x512xf32>
    %30 = arith.truncf %29 : vector<16x512xf32> to vector<16x512xbf16>
    %31 = vector.extract_strided_slice %14 {offsets = [0, 0], sizes = [16, 128], strides = [1, 1]} : vector<16x512xbf16> to vector<16x128xbf16>
    %32 = vector.shape_cast %31 : vector<16x128xbf16> to vector<2x8x128xbf16>
    %33 = vector.extract_strided_slice %22 {offsets = [0, 0], sizes = [16, 128], strides = [1, 1]} : vector<16x512xbf16> to vector<16x128xbf16>
    %34 = vector.shape_cast %33 : vector<16x128xbf16> to vector<2x8x128xbf16>
    %35 = vector.extract_strided_slice %30 {offsets = [0, 0], sizes = [16, 128], strides = [1, 1]} : vector<16x512xbf16> to vector<16x128xbf16>
    %36 = vector.shape_cast %35 : vector<16x128xbf16> to vector<2x8x128xbf16>
    "tpu.trace_start"() <{level = 10 : i32, message = "bqd,bkd->bqk"}> : () -> ()
    %cst_23 = arith.constant dense<0.000000e+00> : vector<2x8x8xf32>
    %37 = tpu.matmul %32, %34, %cst_23 {dimension_numbers = #tpu.dot_dimension_numbers<[2], [2], [1], [1], [0, 0, 0, 1, 1, 1], [0], [0]>} : vector<2x8x128xbf16>, vector<2x8x128xbf16>, vector<2x8x8xf32> -> vector<2x8x8xf32>
    "tpu.trace_stop"() : () -> ()
    %cst_24 = arith.constant dense<0xFF800000> : vector<2x8xf32>
    %38 = vector.multi_reduction <maximumf>, %37, %cst_24 [2] : vector<2x8x8xf32> to vector<2x8xf32>
    %39 = vector.shape_cast %38 : vector<2x8xf32> to vector<2x8x1xf32>
    %40 = vector.broadcast %39 : vector<2x8x1xf32> to vector<2x8x8xf32>
    %41 = arith.subf %37, %40 : vector<2x8x8xf32>
    %42 = math.exp %41 : vector<2x8x8xf32>
    %cst_25 = arith.constant dense<0.000000e+00> : vector<2x8xf32>
    %43 = vector.multi_reduction <add>, %42, %cst_25 [2] : vector<2x8x8xf32> to vector<2x8xf32>
    %44 = vector.shape_cast %43 : vector<2x8xf32> to vector<2x8x1xf32>
    %45 = tpu.reciprocal %44 {approx = true} : vector<2x8x1xf32> -> vector<2x8x1xf32>
    %46 = vector.broadcast %45 : vector<2x8x1xf32> to vector<2x8x8xf32>
    %47 = arith.mulf %42, %46 : vector<2x8x8xf32>
    %48 = arith.truncf %47 : vector<2x8x8xf32> to vector<2x8x8xbf16>
    "tpu.trace_start"() <{level = 10 : i32, message = "bqk,bkd->bqd"}> : () -> ()
    %cst_26 = arith.constant dense<0.000000e+00> : vector<2x8x128xf32>
    %49 = tpu.matmul %48, %36, %cst_26 {dimension_numbers = #tpu.dot_dimension_numbers<[2], [1], [1], [2], [0, 0, 0, 1, 1, 2], [0], [0]>} : vector<2x8x8xbf16>, vector<2x8x128xbf16>, vector<2x8x128xf32> -> vector<2x8x128xf32>
    "tpu.trace_stop"() : () -> ()
    %50 = vector.shape_cast %49 : vector<2x8x128xf32> to vector<16x128xf32>
    %51 = arith.truncf %50 : vector<16x128xf32> to vector<16x128xbf16>
    %c0_27 = arith.constant 0 : index
    %c0_28 = arith.constant 0 : index
    %52 = vector.load %arg24[%c0_27, %c0_28] : memref<16x512xbf16, #tpu.memory_space<vmem>>, vector<16x128xbf16>
    tpu.vector_store %arg24[%c0_27, %c0_28], %51 {strides = array<i32>} : memref<16x512xbf16, #tpu.memory_space<vmem>>, vector<16x128xbf16>,
    %53 = vector.extract_strided_slice %14 {offsets = [0, 128], sizes = [16, 128], strides = [1, 1]} : vector<16x512xbf16> to vector<16x128xbf16>
    %54 = vector.shape_cast %53 : vector<16x128xbf16> to vector<2x8x128xbf16>
    %55 = vector.extract_strided_slice %22 {offsets = [0, 128], sizes = [16, 128], strides = [1, 1]} : vector<16x512xbf16> to vector<16x128xbf16>
    %56 = vector.shape_cast %55 : vector<16x128xbf16> to vector<2x8x128xbf16>
    %57 = vector.extract_strided_slice %30 {offsets = [0, 128], sizes = [16, 128], strides = [1, 1]} : vector<16x512xbf16> to vector<16x128xbf16>
    %58 = vector.shape_cast %57 : vector<16x128xbf16> to vector<2x8x128xbf16>
    "tpu.trace_start"() <{level = 10 : i32, message = "bqd,bkd->bqk"}> : () -> ()
    %cst_29 = arith.constant dense<0.000000e+00> : vector<2x8x8xf32>
    %59 = tpu.matmul %54, %56, %cst_29 {dimension_numbers = #tpu.dot_dimension_numbers<[2], [2], [1], [1], [0, 0, 0, 1, 1, 1], [0], [0]>} : vector<2x8x128xbf16>, vector<2x8x128xbf16>, vector<2x8x8xf32> -> vector<2x8x8xf32>
    "tpu.trace_stop"() : () -> ()
    %cst_30 = arith.constant dense<0xFF800000> : vector<2x8xf32>
    %60 = vector.multi_reduction <maximumf>, %59, %cst_30 [2] : vector<2x8x8xf32> to vector<2x8xf32>
    %61 = vector.shape_cast %60 : vector<2x8xf32> to vector<2x8x1xf32>
    %62 = vector.broadcast %61 : vector<2x8x1xf32> to vector<2x8x8xf32>
    %63 = arith.subf %59, %62 : vector<2x8x8xf32>
    %64 = math.exp %63 : vector<2x8x8xf32>
    %cst_31 = arith.constant dense<0.000000e+00> : vector<2x8xf32>
    %65 = vector.multi_reduction <add>, %64, %cst_31 [2] : vector<2x8x8xf32> to vector<2x8xf32>
    %66 = vector.shape_cast %65 : vector<2x8xf32> to vector<2x8x1xf32>
    %67 = tpu.reciprocal %66 {approx = true} : vector<2x8x1xf32> -> vector<2x8x1xf32>
    %68 = vector.broadcast %67 : vector<2x8x1xf32> to vector<2x8x8xf32>
    %69 = arith.mulf %64, %68 : vector<2x8x8xf32>
    %70 = arith.truncf %69 : vector<2x8x8xf32> to vector<2x8x8xbf16>
    "tpu.trace_start"() <{level = 10 : i32, message = "bqk,bkd->bqd"}> : () -> ()
    %cst_32 = arith.constant dense<0.000000e+00> : vector<2x8x128xf32>
    %71 = tpu.matmul %70, %58, %cst_32 {dimension_numbers = #tpu.dot_dimension_numbers<[2], [1], [1], [2], [0, 0, 0, 1, 1, 2], [0], [0]>} : vector<2x8x8xbf16>, vector<2x8x128xbf16>, vector<2x8x128xf32> -> vector<2x8x128xf32>
    "tpu.trace_stop"() : () -> ()
    %72 = vector.shape_cast %71 : vector<2x8x128xf32> to vector<16x128xf32>
    %73 = arith.truncf %72 : vector<16x128xf32> to vector<16x128xbf16>
    %c0_33 = arith.constant 0 : index
    %c128 = arith.constant 128 : index
    %74 = vector.load %arg24[%c0_33, %c128] : memref<16x512xbf16, #tpu.memory_space<vmem>>, vector<16x128xbf16>
    tpu.vector_store %arg24[%c0_33, %c128], %73 {strides = array<i32>} : memref<16x512xbf16, #tpu.memory_space<vmem>>, vector<16x128xbf16>,
    %75 = vector.extract_strided_slice %14 {offsets = [0, 256], sizes = [16, 128], strides = [1, 1]} : vector<16x512xbf16> to vector<16x128xbf16>
    %76 = vector.shape_cast %75 : vector<16x128xbf16> to vector<2x8x128xbf16>
    %77 = vector.extract_strided_slice %22 {offsets = [0, 256], sizes = [16, 128], strides = [1, 1]} : vector<16x512xbf16> to vector<16x128xbf16>
    %78 = vector.shape_cast %77 : vector<16x128xbf16> to vector<2x8x128xbf16>
    %79 = vector.extract_strided_slice %30 {offsets = [0, 256], sizes = [16, 128], strides = [1, 1]} : vector<16x512xbf16> to vector<16x128xbf16>
    %80 = vector.shape_cast %79 : vector<16x128xbf16> to vector<2x8x128xbf16>
    "tpu.trace_start"() <{level = 10 : i32, message = "bqd,bkd->bqk"}> : () -> ()
    %cst_34 = arith.constant dense<0.000000e+00> : vector<2x8x8xf32>
    %81 = tpu.matmul %76, %78, %cst_34 {dimension_numbers = #tpu.dot_dimension_numbers<[2], [2], [1], [1], [0, 0, 0, 1, 1, 1], [0], [0]>} : vector<2x8x128xbf16>, vector<2x8x128xbf16>, vector<2x8x8xf32> -> vector<2x8x8xf32>
    "tpu.trace_stop"() : () -> ()
    %cst_35 = arith.constant dense<0xFF800000> : vector<2x8xf32>
    %82 = vector.multi_reduction <maximumf>, %81, %cst_35 [2] : vector<2x8x8xf32> to vector<2x8xf32>
    %83 = vector.shape_cast %82 : vector<2x8xf32> to vector<2x8x1xf32>
    %84 = vector.broadcast %83 : vector<2x8x1xf32> to vector<2x8x8xf32>
    %85 = arith.subf %81, %84 : vector<2x8x8xf32>
    %86 = math.exp %85 : vector<2x8x8xf32>
    %cst_36 = arith.constant dense<0.000000e+00> : vector<2x8xf32>
    %87 = vector.multi_reduction <add>, %86, %cst_36 [2] : vector<2x8x8xf32> to vector<2x8xf32>
    %88 = vector.shape_cast %87 : vector<2x8xf32> to vector<2x8x1xf32>
    %89 = tpu.reciprocal %88 {approx = true} : vector<2x8x1xf32> -> vector<2x8x1xf32>
    %90 = vector.broadcast %89 : vector<2x8x1xf32> to vector<2x8x8xf32>
    %91 = arith.mulf %86, %90 : vector<2x8x8xf32>
    %92 = arith.truncf %91 : vector<2x8x8xf32> to vector<2x8x8xbf16>
    "tpu.trace_start"() <{level = 10 : i32, message = "bqk,bkd->bqd"}> : () -> ()
    %cst_37 = arith.constant dense<0.000000e+00> : vector<2x8x128xf32>
    %93 = tpu.matmul %92, %80, %cst_37 {dimension_numbers = #tpu.dot_dimension_numbers<[2], [1], [1], [2], [0, 0, 0, 1, 1, 2], [0], [0]>} : vector<2x8x8xbf16>, vector<2x8x128xbf16>, vector<2x8x128xf32> -> vector<2x8x128xf32>
    "tpu.trace_stop"() : () -> ()
    %94 = vector.shape_cast %93 : vector<2x8x128xf32> to vector<16x128xf32>
    %95 = arith.truncf %94 : vector<16x128xf32> to vector<16x128xbf16>
    %c0_38 = arith.constant 0 : index
    %c256 = arith.constant 256 : index
    %96 = vector.load %arg24[%c0_38, %c256] : memref<16x512xbf16, #tpu.memory_space<vmem>>, vector<16x128xbf16>
    tpu.vector_store %arg24[%c0_38, %c256], %95 {strides = array<i32>} : memref<16x512xbf16, #tpu.memory_space<vmem>>, vector<16x128xbf16>,
    %97 = vector.extract_strided_slice %14 {offsets = [0, 384], sizes = [16, 128], strides = [1, 1]} : vector<16x512xbf16> to vector<16x128xbf16>
    %98 = vector.shape_cast %97 : vector<16x128xbf16> to vector<2x8x128xbf16>
    %99 = vector.extract_strided_slice %22 {offsets = [0, 384], sizes = [16, 128], strides = [1, 1]} : vector<16x512xbf16> to vector<16x128xbf16>
    %100 = vector.shape_cast %99 : vector<16x128xbf16> to vector<2x8x128xbf16>
    %101 = vector.extract_strided_slice %30 {offsets = [0, 384], sizes = [16, 128], strides = [1, 1]} : vector<16x512xbf16> to vector<16x128xbf16>
    %102 = vector.shape_cast %101 : vector<16x128xbf16> to vector<2x8x128xbf16>
    "tpu.trace_start"() <{level = 10 : i32, message = "bqd,bkd->bqk"}> : () -> ()
    %cst_39 = arith.constant dense<0.000000e+00> : vector<2x8x8xf32>
    %103 = tpu.matmul %98, %100, %cst_39 {dimension_numbers = #tpu.dot_dimension_numbers<[2], [2], [1], [1], [0, 0, 0, 1, 1, 1], [0], [0]>} : vector<2x8x128xbf16>, vector<2x8x128xbf16>, vector<2x8x8xf32> -> vector<2x8x8xf32>
    "tpu.trace_stop"() : () -> ()
    %cst_40 = arith.constant dense<0xFF800000> : vector<2x8xf32>
    %104 = vector.multi_reduction <maximumf>, %103, %cst_40 [2] : vector<2x8x8xf32> to vector<2x8xf32>
    %105 = vector.shape_cast %104 : vector<2x8xf32> to vector<2x8x1xf32>
    %106 = vector.broadcast %105 : vector<2x8x1xf32> to vector<2x8x8xf32>
    %107 = arith.subf %103, %106 : vector<2x8x8xf32>
    %108 = math.exp %107 : vector<2x8x8xf32>
    %cst_41 = arith.constant dense<0.000000e+00> : vector<2x8xf32>
    %109 = vector.multi_reduction <add>, %108, %cst_41 [2] : vector<2x8x8xf32> to vector<2x8xf32>
    %110 = vector.shape_cast %109 : vector<2x8xf32> to vector<2x8x1xf32>
    %111 = tpu.reciprocal %110 {approx = true} : vector<2x8x1xf32> -> vector<2x8x1xf32>
    %112 = vector.broadcast %111 : vector<2x8x1xf32> to vector<2x8x8xf32>
    %113 = arith.mulf %108, %112 : vector<2x8x8xf32>
    %114 = arith.truncf %113 : vector<2x8x8xf32> to vector<2x8x8xbf16>
    "tpu.trace_start"() <{level = 10 : i32, message = "bqk,bkd->bqd"}> : () -> ()
    %cst_42 = arith.constant dense<0.000000e+00> : vector<2x8x128xf32>
    %115 = tpu.matmul %114, %102, %cst_42 {dimension_numbers = #tpu.dot_dimension_numbers<[2], [1], [1], [2], [0, 0, 0, 1, 1, 2], [0], [0]>} : vector<2x8x8xbf16>, vector<2x8x128xbf16>, vector<2x8x128xf32> -> vector<2x8x128xf32>
    "tpu.trace_stop"() : () -> ()
    %116 = vector.shape_cast %115 : vector<2x8x128xf32> to vector<16x128xf32>
    %117 = arith.truncf %116 : vector<16x128xf32> to vector<16x128xbf16>
    %c0_43 = arith.constant 0 : index
    %c384 = arith.constant 384 : index
    %118 = vector.load %arg24[%c0_43, %c384] : memref<16x512xbf16, #tpu.memory_space<vmem>>, vector<16x128xbf16>
    tpu.vector_store %arg24[%c0_43, %c384], %117 {strides = array<i32>} : memref<16x512xbf16, #tpu.memory_space<vmem>>, vector<16x128xbf16>,
    %c0_44 = arith.constant 0 : index
    %c0_45 = arith.constant 0 : index
    %119 = vector.load %arg24[%c0_44, %c0_45] : memref<16x512xbf16, #tpu.memory_space<vmem>>, vector<16x512xbf16>
    %c0_46 = arith.constant 0 : index
    %c0_47 = arith.constant 0 : index
    %c0_48 = arith.constant 0 : index
    %120 = vector.load %arg12[%c0_46, %c0_47, %c0_48] : memref<1x512x32xbf16, #tpu.memory_space<vmem>>, vector<1x512x32xbf16>
    %121 = vector.shape_cast %120 : vector<1x512x32xbf16> to vector<512x32xbf16>
    %cst_49 = arith.constant dense<0.000000e+00> : vector<16x32xf32>
    %122 = tpu.matmul %119, %121, %cst_49 {dimension_numbers = #tpu.dot_dimension_numbers<[1], [0], [0], [1], [0, 0, 1, 1], [], []>} : vector<16x512xbf16>, vector<512x32xbf16>, vector<16x32xf32> -> vector<16x32xf32>
    %c0_50 = arith.constant 0 : index
    %c0_51 = arith.constant 0 : index
    %c0_52 = arith.constant 0 : index
    %123 = vector.load %arg13[%c0_50, %c0_51, %c0_52] : memref<1x1x32xf32, #tpu.memory_space<vmem>>, vector<1x1x32xf32>
    %124 = vector.shape_cast %123 : vector<1x1x32xf32> to vector<1x32xf32>
    %125 = vector.broadcast %124 : vector<1x32xf32> to vector<16x32xf32>
    %126 = arith.addf %122, %125 : vector<16x32xf32>
    %127 = arith.addf %3, %126 : vector<16x32xf32>
    %c0_53 = arith.constant 0 : index
    %c0_54 = arith.constant 0 : index
    %c0_55 = arith.constant 0 : index
    %128 = vector.load %arg14[%c0_53, %c0_54, %c0_55] : memref<1x1x32xf32, #tpu.memory_space<vmem>>, vector<1x1x32xf32>
    %129 = vector.shape_cast %128 : vector<1x1x32xf32> to vector<1x32xf32>
    %c0_56 = arith.constant 0 : index
    %c0_57 = arith.constant 0 : index
    %c0_58 = arith.constant 0 : index
    %130 = vector.load %arg15[%c0_56, %c0_57, %c0_58] : memref<1x1x32xf32, #tpu.memory_space<vmem>>, vector<1x1x32xf32>
    %131 = vector.shape_cast %130 : vector<1x1x32xf32> to vector<1x32xf32>
    %cst_59 = arith.constant dense<0.000000e+00> : vector<16xf32>
    %132 = vector.multi_reduction <add>, %127, %cst_59 [1] : vector<16x32xf32> to vector<16xf32>
    %133 = vector.shape_cast %132 : vector<16xf32> to vector<16x1xf32>
    %cst_60 = arith.constant 3.200000e+01 : f32
    %134 = vector.broadcast %cst_60 : f32 to vector<16x1xf32>
    %135 = arith.divf %133, %134 : vector<16x1xf32>
    %136 = vector.broadcast %135 : vector<16x1xf32> to vector<16x32xf32>
    %137 = arith.subf %127, %136 : vector<16x32xf32>
    %138 = arith.mulf %137, %137 : vector<16x32xf32>
    %cst_61 = arith.constant dense<0.000000e+00> : vector<16xf32>
    %139 = vector.multi_reduction <add>, %138, %cst_61 [1] : vector<16x32xf32> to vector<16xf32>
    %140 = vector.shape_cast %139 : vector<16xf32> to vector<16x1xf32>
    %cst_62 = arith.constant 3.200000e+01 : f32
    %141 = vector.broadcast %cst_62 : f32 to vector<16x1xf32>
    %142 = arith.divf %140, %141 : vector<16x1xf32>
    %cst_63 = arith.constant 9.99999974E-6 : f32
    %143 = vector.broadcast %cst_63 : f32 to vector<16x1xf32>
    %144 = arith.addf %142, %143 : vector<16x1xf32>
    %145 = math.rsqrt %144 : vector<16x1xf32>
    %146 = vector.broadcast %145 : vector<16x1xf32> to vector<16x32xf32>
    %147 = arith.mulf %137, %146 : vector<16x32xf32>
    %148 = vector.broadcast %129 : vector<1x32xf32> to vector<16x32xf32>
    %149 = arith.mulf %147, %148 : vector<16x32xf32>
    %150 = vector.broadcast %131 : vector<1x32xf32> to vector<16x32xf32>
    %151 = arith.addf %149, %150 : vector<16x32xf32>
    %152 = arith.truncf %151 : vector<16x32xf32> to vector<16x32xbf16>
    %c0_64 = arith.constant 0 : index
    %c0_65 = arith.constant 0 : index
    %c0_66 = arith.constant 0 : index
    %153 = vector.load %arg16[%c0_64, %c0_65, %c0_66] : memref<1x32x64xbf16, #tpu.memory_space<vmem>>, vector<1x32x64xbf16>
    %154 = vector.shape_cast %153 : vector<1x32x64xbf16> to vector<32x64xbf16>
    %cst_67 = arith.constant dense<0.000000e+00> : vector<16x64xf32>
    %155 = tpu.matmul %152, %154, %cst_67 {dimension_numbers = #tpu.dot_dimension_numbers<[1], [0], [0], [1], [0, 0, 1, 1], [], []>} : vector<16x32xbf16>, vector<32x64xbf16>, vector<16x64xf32> -> vector<16x64xf32>
    %c0_68 = arith.constant 0 : index
    %c0_69 = arith.constant 0 : index
    %c0_70 = arith.constant 0 : index
    %156 = vector.load %arg17[%c0_68, %c0_69, %c0_70] : memref<1x1x64xf32, #tpu.memory_space<vmem>>, vector<1x1x64xf32>
    %157 = vector.shape_cast %156 : vector<1x1x64xf32> to vector<1x64xf32>
    %158 = vector.broadcast %157 : vector<1x64xf32> to vector<16x64xf32>
    %159 = arith.addf %155, %158 : vector<16x64xf32>
    %cst_71 = arith.constant 0.000000e+00 : f32
    %160 = vector.broadcast %cst_71 : f32 to vector<16x64xf32>
    %161 = arith.maximumf %159, %160 : vector<16x64xf32>
    %162 = arith.truncf %161 : vector<16x64xf32> to vector<16x64xbf16>
    %c0_72 = arith.constant 0 : index
    %c0_73 = arith.constant 0 : index
    %c0_74 = arith.constant 0 : index
    %163 = vector.load %arg18[%c0_72, %c0_73, %c0_74] : memref<1x64x32xbf16, #tpu.memory_space<vmem>>, vector<1x64x32xbf16>
    %164 = vector.shape_cast %163 : vector<1x64x32xbf16> to vector<64x32xbf16>
    %cst_75 = arith.constant dense<0.000000e+00> : vector<16x32xf32>
    %165 = tpu.matmul %162, %164, %cst_75 {dimension_numbers = #tpu.dot_dimension_numbers<[1], [0], [0], [1], [0, 0, 1, 1], [], []>} : vector<16x64xbf16>, vector<64x32xbf16>, vector<16x32xf32> -> vector<16x32xf32>
    %c0_76 = arith.constant 0 : index
    %c0_77 = arith.constant 0 : index
    %c0_78 = arith.constant 0 : index
    %166 = vector.load %arg19[%c0_76, %c0_77, %c0_78] : memref<1x1x32xf32, #tpu.memory_space<vmem>>, vector<1x1x32xf32>
    %167 = vector.shape_cast %166 : vector<1x1x32xf32> to vector<1x32xf32>
    %168 = vector.broadcast %167 : vector<1x32xf32> to vector<16x32xf32>
    %169 = arith.addf %165, %168 : vector<16x32xf32>
    %170 = arith.addf %151, %169 : vector<16x32xf32>
    %c0_79 = arith.constant 0 : index
    %c0_80 = arith.constant 0 : index
    %c0_81 = arith.constant 0 : index
    %171 = vector.load %arg20[%c0_79, %c0_80, %c0_81] : memref<1x1x32xf32, #tpu.memory_space<vmem>>, vector<1x1x32xf32>
    %172 = vector.shape_cast %171 : vector<1x1x32xf32> to vector<1x32xf32>
    %c0_82 = arith.constant 0 : index
    %c0_83 = arith.constant 0 : index
    %c0_84 = arith.constant 0 : index
    %173 = vector.load %arg21[%c0_82, %c0_83, %c0_84] : memref<1x1x32xf32, #tpu.memory_space<vmem>>, vector<1x1x32xf32>
    %174 = vector.shape_cast %173 : vector<1x1x32xf32> to vector<1x32xf32>
    %cst_85 = arith.constant dense<0.000000e+00> : vector<16xf32>
    %175 = vector.multi_reduction <add>, %170, %cst_85 [1] : vector<16x32xf32> to vector<16xf32>
    %176 = vector.shape_cast %175 : vector<16xf32> to vector<16x1xf32>
    %cst_86 = arith.constant 3.200000e+01 : f32
    %177 = vector.broadcast %cst_86 : f32 to vector<16x1xf32>
    %178 = arith.divf %176, %177 : vector<16x1xf32>
    %179 = vector.broadcast %178 : vector<16x1xf32> to vector<16x32xf32>
    %180 = arith.subf %170, %179 : vector<16x32xf32>
    %181 = arith.mulf %180, %180 : vector<16x32xf32>
    %cst_87 = arith.constant dense<0.000000e+00> : vector<16xf32>
    %182 = vector.multi_reduction <add>, %181, %cst_87 [1] : vector<16x32xf32> to vector<16xf32>
    %183 = vector.shape_cast %182 : vector<16xf32> to vector<16x1xf32>
    %cst_88 = arith.constant 3.200000e+01 : f32
    %184 = vector.broadcast %cst_88 : f32 to vector<16x1xf32>
    %185 = arith.divf %183, %184 : vector<16x1xf32>
    %cst_89 = arith.constant 9.99999974E-6 : f32
    %186 = vector.broadcast %cst_89 : f32 to vector<16x1xf32>
    %187 = arith.addf %185, %186 : vector<16x1xf32>
    %188 = math.rsqrt %187 : vector<16x1xf32>
    %189 = vector.broadcast %188 : vector<16x1xf32> to vector<16x32xf32>
    %190 = arith.mulf %180, %189 : vector<16x32xf32>
    %191 = vector.broadcast %172 : vector<1x32xf32> to vector<16x32xf32>
    %192 = arith.mulf %190, %191 : vector<16x32xf32>
    %193 = vector.broadcast %174 : vector<1x32xf32> to vector<16x32xf32>
    %194 = arith.addf %192, %193 : vector<16x32xf32>
    %c0_90 = arith.constant 0 : index
    %c0_91 = arith.constant 0 : index
    %195 = vector.load %arg23[%c0_90, %c0_91] : memref<16x32xf32, #tpu.memory_space<vmem>>, vector<16x32xf32>
    tpu.vector_store %arg23[%c0_90, %c0_91], %194 {strides = array<i32>} : memref<16x32xf32, #tpu.memory_space<vmem>>, vector<16x32xf32>,
    %c1_i32 = arith.constant 1 : i32
    %196 = arith.cmpi eq, %arg1, %c1_i32 : i32
    %197 = arith.extui %196 : i1 to i32
    %c0_i32_92 = arith.constant 0 : i32
    %198 = arith.cmpi ne, %197, %c0_i32_92 : i32
    scf.if %198 {
      %199 = vector.shape_cast %194 : vector<16x32xf32> to vector<2x8x32xf32>
      %c0_93 = arith.constant 0 : index
      %c0_94 = arith.constant 0 : index
      %c0_95 = arith.constant 0 : index
      %200 = vector.load %arg3[%c0_93, %c0_94, %c0_95] : memref<2x8x1xf32, #tpu.memory_space<vmem>>, vector<2x8x1xf32>
      %201 = vector.broadcast %200 : vector<2x8x1xf32> to vector<2x8x32xf32>
      %202 = arith.mulf %199, %201 : vector<2x8x32xf32>
      %c0_96 = arith.constant 0 : index
      %c0_97 = arith.constant 0 : index
      %c0_98 = arith.constant 0 : index
      %203 = vector.load %arg22[%c0_96, %c0_97, %c0_98] : memref<2x8x32xf32, #tpu.memory_space<vmem>>, vector<2x8x32xf32>
      tpu.vector_store %arg22[%c0_96, %c0_97, %c0_98], %202 {strides = array<i32>} : memref<2x8x32xf32, #tpu.memory_space<vmem>>, vector<2x8x32xf32>,
    } else {
    }
    return
  }
  func.func @transform_0(%arg0: i32, %arg1: i32) -> (i32, i32, i32) {
    %c0_i32 = arith.constant 0 : i32
    %c0_i32_0 = arith.constant 0 : i32
    %c0_i32_1 = arith.constant 0 : i32
    return %arg0, %c0_i32, %c0_i32_0 : i32, i32, i32
  }
  func.func @transform_1(%arg0: i32, %arg1: i32) -> (i32, i32, i32) {
    %c0_i32 = arith.constant 0 : i32
    %c0_i32_0 = arith.constant 0 : i32
    %c0_i32_1 = arith.constant 0 : i32
    return %arg0, %c0_i32, %c0_i32_0 : i32, i32, i32
  }
  func.func @transform_2(%arg0: i32, %arg1: i32) -> (i32, i32) {
    %c0_i32 = arith.constant 0 : i32
    %c0_i32_0 = arith.constant 0 : i32
    %c0_i32_1 = arith.constant 0 : i32
    return %c0_i32, %c0_i32_0 : i32, i32
  }
  func.func @transform_3(%arg0: i32, %arg1: i32) -> (i32, i32) {
    %c0_i32 = arith.constant 0 : i32
    %c0_i32_0 = arith.constant 0 : i32
    %c0_i32_1 = arith.constant 0 : i32
    return %c0_i32, %c0_i32_0 : i32, i32
  }
  func.func @transform_4(%arg0: i32, %arg1: i32) -> (i32, i32, i32) {
    %c0_i32 = arith.constant 0 : i32
    %c0_i32_0 = arith.constant 0 : i32
    %c0_i32_1 = arith.constant 0 : i32
    return %arg1, %c0_i32, %c0_i32_0 : i32, i32, i32
  }
  func.func @transform_5(%arg0: i32, %arg1: i32) -> (i32, i32, i32) {
    %c0_i32 = arith.constant 0 : i32
    %c0_i32_0 = arith.constant 0 : i32
    %c0_i32_1 = arith.constant 0 : i32
    return %arg1, %c0_i32, %c0_i32_0 : i32, i32, i32
  }
  func.func @transform_6(%arg0: i32, %arg1: i32) -> (i32, i32, i32) {
    %c0_i32 = arith.constant 0 : i32
    %c0_i32_0 = arith.constant 0 : i32
    %c0_i32_1 = arith.constant 0 : i32
    return %arg1, %c0_i32, %c0_i32_0 : i32, i32, i32
  }
  func.func @transform_7(%arg0: i32, %arg1: i32) -> (i32, i32, i32) {
    %c0_i32 = arith.constant 0 : i32
    %c0_i32_0 = arith.constant 0 : i32
    %c0_i32_1 = arith.constant 0 : i32
    return %arg1, %c0_i32, %c0_i32_0 : i32, i32, i32
  }
  func.func @transform_8(%arg0: i32, %arg1: i32) -> (i32, i32, i32) {
    %c0_i32 = arith.constant 0 : i32
    %c0_i32_0 = arith.constant 0 : i32
    %c0_i32_1 = arith.constant 0 : i32
    return %arg1, %c0_i32, %c0_i32_0 : i32, i32, i32
  }
  func.func @transform_9(%arg0: i32, %arg1: i32) -> (i32, i32, i32) {
    %c0_i32 = arith.constant 0 : i32
    %c0_i32_0 = arith.constant 0 : i32
    %c0_i32_1 = arith.constant 0 : i32
    return %arg1, %c0_i32, %c0_i32_0 : i32, i32, i32
  }
  func.func @transform_10(%arg0: i32, %arg1: i32) -> (i32, i32, i32) {
    %c0_i32 = arith.constant 0 : i32
    %c0_i32_0 = arith.constant 0 : i32
    %c0_i32_1 = arith.constant 0 : i32
    return %arg1, %c0_i32, %c0_i32_0 : i32, i32, i32
  }
  func.func @transform_11(%arg0: i32, %arg1: i32) -> (i32, i32, i32) {
    %c0_i32 = arith.constant 0 : i32
    %c0_i32_0 = arith.constant 0 : i32
    %c0_i32_1 = arith.constant 0 : i32
    return %arg1, %c0_i32, %c0_i32_0 : i32, i32, i32
  }
  func.func @transform_12(%arg0: i32, %arg1: i32) -> (i32, i32, i32) {
    %c0_i32 = arith.constant 0 : i32
    %c0_i32_0 = arith.constant 0 : i32
    %c0_i32_1 = arith.constant 0 : i32
    return %arg1, %c0_i32, %c0_i32_0 : i32, i32, i32
  }
  func.func @transform_13(%arg0: i32, %arg1: i32) -> (i32, i32, i32) {
    %c0_i32 = arith.constant 0 : i32
    %c0_i32_0 = arith.constant 0 : i32
    %c0_i32_1 = arith.constant 0 : i32
    return %arg1, %c0_i32, %c0_i32_0 : i32, i32, i32
  }
  func.func @transform_14(%arg0: i32, %arg1: i32) -> (i32, i32, i32) {
    %c0_i32 = arith.constant 0 : i32
    %c0_i32_0 = arith.constant 0 : i32
    %c0_i32_1 = arith.constant 0 : i32
    return %arg1, %c0_i32, %c0_i32_0 : i32, i32, i32
  }
  func.func @transform_15(%arg0: i32, %arg1: i32) -> (i32, i32, i32) {
    %c0_i32 = arith.constant 0 : i32
    %c0_i32_0 = arith.constant 0 : i32
    %c0_i32_1 = arith.constant 0 : i32
    return %arg1, %c0_i32, %c0_i32_0 : i32, i32, i32
  }
  func.func @transform_16(%arg0: i32, %arg1: i32) -> (i32, i32, i32) {
    %c0_i32 = arith.constant 0 : i32
    %c0_i32_0 = arith.constant 0 : i32
    %c0_i32_1 = arith.constant 0 : i32
    return %arg1, %c0_i32, %c0_i32_0 : i32, i32, i32
  }
  func.func @transform_17(%arg0: i32, %arg1: i32) -> (i32, i32, i32) {
    %c0_i32 = arith.constant 0 : i32
    %c0_i32_0 = arith.constant 0 : i32
    %c0_i32_1 = arith.constant 0 : i32
    return %arg1, %c0_i32, %c0_i32_0 : i32, i32, i32
  }
  func.func @transform_18(%arg0: i32, %arg1: i32) -> (i32, i32, i32) {
    %c0_i32 = arith.constant 0 : i32
    %c0_i32_0 = arith.constant 0 : i32
    %c0_i32_1 = arith.constant 0 : i32
    return %arg1, %c0_i32, %c0_i32_0 : i32, i32, i32
  }
  func.func @transform_19(%arg0: i32, %arg1: i32) -> (i32, i32, i32) {
    %c0_i32 = arith.constant 0 : i32
    %c0_i32_0 = arith.constant 0 : i32
    %c0_i32_1 = arith.constant 0 : i32
    return %arg1, %c0_i32, %c0_i32_0 : i32, i32, i32
  }
  func.func @transform_20(%arg0: i32, %arg1: i32) -> (i32, i32, i32) {
    %c0_i32 = arith.constant 0 : i32
    %c0_i32_0 = arith.constant 0 : i32
    %c0_i32_1 = arith.constant 0 : i32
    return %arg0, %c0_i32, %c0_i32_0 : i32, i32, i32
  }
}

</mosaic_0001>

<bundles_post_ra>
// kernel: tpu_custom_call.1
= control target key start
LH: loop header
LB: loop body
LE: loop exit
PB: predicated region body
PF: predicated region fallthrough
CT: control target
= control target key end

     0   :  { %s4421_s0 = inlined_call_operand.vmem [shape: bf16[2,8,4], index: 0, kind: input, shape index: {}]   ;;  %s4422_s1 = inlined_call_operand.vmem [shape: f32[2,8,1], index: 1, kind: input, shape index: {}]   ;;  %s4423_s2 = inlined_call_operand.vmem [shape: bf16[4,32], index: 2, kind: input, shape index: {}]   ;;  %s4424_s3 = inlined_call_operand.vmem [shape: f32[1,32], index: 3, kind: input, shape index: {}]   ;;  %s4425_s4 = inlined_call_operand.vmem [shape: bf16[2,32,512], index: 4, kind: input, shape index: {}]   ;;  %s4426_s5 = inlined_call_operand.vmem [shape: f32[2,1,512], index: 5, kind: input, shape index: {}]   ;;  %s4427_s6 = inlined_call_operand.vmem [shape: bf16[2,32,512], index: 6, kind: input, shape index: {}]   ;;  %s4428_s7 = inlined_call_operand.vmem [shape: f32[2,1,512], index: 7, kind: input, shape index: {}]   ;;  %s4429_s8 = inlined_call_operand.vmem [shape: bf16[2,32,512], index: 8, kind: input, shape index: {}]   ;;  %s4430_s9 = inlined_call_operand.vmem [shape: f32[2,1,512], index: 9, kind: input, shape index: {}]   ;;  %s4431_s10 = inlined_call_operand.vmem [shape: bf16[2,512,32], index: 10, kind: input, shape index: {}]   ;;  %s4432_s11 = inlined_call_operand.vmem [shape: f32[2,1,32], index: 11, kind: input, shape index: {}]   ;;  %s4433_s12 = inlined_call_operand.vmem [shape: f32[2,1,32], index: 12, kind: input, shape index: {}]   ;;  %s4434_s13 = inlined_call_operand.vmem [shape: f32[2,1,32], index: 13, kind: input, shape index: {}]   ;;  %s4435_s14 = inlined_call_operand.vmem [shape: bf16[2,32,64], index: 14, kind: input, shape index: {}]   ;;  %s4436_s15 = inlined_call_operand.vmem [shape: f32[2,1,64], index: 15, kind: input, shape index: {}]   ;;  %s4437_s16 = inlined_call_operand.vmem [shape: bf16[2,64,32], index: 16, kind: input, shape index: {}]   ;;  %s4438_s17 = inlined_call_operand.vmem [shape: f32[2,1,32], index: 17, kind: input, shape index: {}]   ;;  %s4439_s18 = inlined_call_operand.vmem [shape: f32[2,1,32], index: 18, kind: input, shape index: {}]   ;;  %s4440_s19 = inlined_call_operand.vmem [shape: f32[2,1,32], index: 19, kind: input, shape index: {}]   ;;  %s4441_s20 = inlined_call_operand.hbm [shape: f32[2,8,32], index: 20, kind: output, shape index: {}]  }
   0x1   :  { %4448 = sst [smem:[#allocation12_spill]] %s4421_s0 }
   0x2   :  { %4449 = sst [smem:[#allocation13_spill]] %s4422_s1 }
   0x3   :  { %4450 = sst [smem:[#allocation14_spill]] %s4423_s2 }
   0x4   :  { %4451 = sst [smem:[#allocation15_spill]] %s4424_s3 }
   0x5   :  { %4452 = sst [smem:[#allocation16_spill]] %s4425_s4 }
   0x6   :  { %4453 = sst [smem:[#allocation17_spill]] %s4426_s5 }
   0x7   :  { %4454 = sst [smem:[#allocation18_spill]] %s4427_s6 }
   0x8   :  { %4455 = sst [smem:[#allocation19_spill]] %s4429_s8 }
   0x9   :  { %4456 = sst [smem:[#allocation20_spill]] %s4430_s9 }
   0xa   :  { %4457 = sst [smem:[#allocation21_spill]] %s4431_s10 }
   0xb   :  { %4458 = sst [smem:[#allocation22_spill]] %s4435_s14 }
   0xc   :  { %4459 = sst [smem:[#allocation23_spill]] %s4440_s19 }
   0xd   :  { %4460 = sst [smem:[#allocation24_spill]] %s4441_s20 }
   0xe   :  { %25 = vsyncpa [#allocation5], 0  ;;  %s3936_s1 = smov 0   ;;  %s3938_s22 = smov 0  }
   0xf   :  { %s3940_s23 = smov 0  }
  0x10 LB: > { %4461 = sst [smem:[#allocation7_spill]] %s3812_s1  ;;  %s40_s2 = sadd.s32 1, %s3816_s22  ;;  %s3820_s23 = sphi %s3940_s23, %s31_s23   ;;  %s3816_s22 = sphi %s3938_s22, %s4497_s22   ;;  %s3812_s1 = sphi %s3936_s1, %s4496_s1  }
  0x11   : > { %4462 = sst [smem:[#allocation8_spill]] %s3816_s22  ;;  %p41_p0 = scmp.ge.s32.totalorder %s40_s2, 2 }
  0x12   : > { %4463 = sst [smem:[#allocation9_spill]] %s3820_s23  ;;  %p3239_p1 = scmp.ge.s32.totalorder %s3820_s23, 1 }
  0x13   : > { %p730_p2 = scmp.lt.s32.totalorder %s3820_s23, 3  ;;  %s4499_s2 = smov (%p41_p0, %s40_s2), 0 }
  0x14   : > { %4464 = sst [smem:[#allocation10_spill]] %s4499_s2 }
  0x15   : > { %p731_p3 = pnand %p3239_p1, %p730_p2 }
  0x17   : > { %734 = sbr.rel (%p731_p3) target bundleno = 4203 (0x106b), region = 100 }
  0x1e   : > { %p863_p4 = scmp.lt.s32.totalorder %s3812_s1, 1  ;;  %s4465_s4 = sld [smem:[#allocation16_spill]] }
  0x1f   : > { %s4468_s6 = sld [smem:[#allocation18_spill]]  ;;  %s4469_s8 = sld [smem:[#allocation19_spill]] }
  0x20   : > { %s3959_s25 = scalar_select %p863_p4, %s3812_s1, 1 }
  0x21   : > { %s4471_s10 = sld [smem:[#allocation21_spill]]  ;;  %s4472_s14 = sld [smem:[#allocation22_spill]] }
  0x22   : > { %s3373_s3 = sshll.u32 %s3959_s25, 6  ;;  %s3963_s26 = sshll.u32 %s3959_s25, 2 }
  0x23   : > { %s3376_s0 = sshll.u32 %s3959_s25, 8  ;;  %s3377_s19 = sshll.u32 %s3959_s25, 4 }
  0x24   : > { %s3968_s29 = scalar_lea.vmem %s4465_s4, %s3373_s3  ;;  %s919_s27 = scalar_lea.vmem %s4438_s17, %s3959_s25 }
  0x25   : > { %4466 = sst [smem:[#allocation11_spill]] %s3968_s29  ;;  %s3977_s22 = scalar_lea.vmem %s4468_s6, %s3373_s3 }
  0x26   : > { %s3986_s4 = scalar_lea.vmem %s4469_s8, %s3373_s3  ;;  %s3378_s6 = sshll.u32 %s3959_s25, 5 }
  0x27   : > { %s4000_s20 = scalar_lea.vmem %s4471_s10, %s3376_s0  ;;  %s4014_s9 = scalar_lea.vmem %s4472_s14, %s3377_s19 }
  0x28   : > { %s4028_s3 = scalar_lea.vmem %s4437_s16, %s3378_s6  ;;  %s922_s30 = scalar_lea.vmem %s4439_s18, %s3959_s25 }
  0x29   : > { %s4473_s10 = sld [smem:[#allocation23_spill]]  ;;  %s4474_s21 = sld [smem:[#allocation7_spill]] }
  0x2f   : > { %s925_s14 = scalar_lea.vmem %s4473_s10, %s3959_s25  ;;  %p3255_p5 = scmp.ne.s32.totalorder %s4474_s21, 0 }
  0x30   : > { %s4475_s2 = sld [smem:[#allocation14_spill]] (!%p3255_p5)  ;;  %vm951_vm0 = vcmask (!%p3255_p5), 1041408   ;;  %v3822_v1 = vmov (!%p3255_p5), 0.0   ;;  %vm3823_vm1 = vmmov (!%p3255_p5), 0   ;;  %s4476_s6 = sld [smem:[#allocation12_spill]] (!%p3255_p5)  ;;  %vm947_vm2 = vcmask (!%p3255_p5), 31744  }
  0x31   : > { %931 = sbr.rel (%p3255_p5) target bundleno = 276 (0x114), region = 104  ;;  %3489 = vmatprep.subr.bf16.mxu0 (!%p3255_p5), %v3822_v1  ;;  %3491 = vmatprep.mubr.msk.bf16.mxu0 (!%p3255_p5), %vm3823_vm1, %v3822_v1  ;;  %s4477_s23 = sld [smem:[#allocation15_spill]] (!%p3255_p5)  ;;  %vm996_vm3 = vcmask (!%p3255_p5), 261120  }
  0x36   : > { %v934_v0 = vld [vmem:[%s4475_s2] sm:$0x3] (!%p3255_p5) }
  0x37   : > { %v953_v2 = vsel (!%p3255_p5), %vm951_vm0, %v934_v0, 0  ;;  %v3650_v3 = vld [vmem:[%s4476_s6] sm:$0xff] (!%p3255_p5)  }
  0x38   : > { %3490 = vmatpush3.bf16.msra.mxu0 %v953_v2  ;;  %v3256_v4 = vld [vmem:[%s4477_s23] ss:$0 sm:$0xff] }
  0x3b   : > { %3492 = vmatmul.mubr.msk.bf16.vlgmr.msra.gmra.mrb[0].mxu0 %vm947_vm2, %v3650_v3 }
 0x10e   : > { %v989_v5 = vpop.f32.mrb[0].mxu0 }
 0x10f   : > { %v990_v6 = vadd.f32 %v3256_v4, %v989_v5  ;;  %v3493_v7 = vpop.f32.mrb[1].mxu0 }
 0x110   : > { %v992_v8 = vpop.f32.mrb[2].mxu0 }
 0x111   : > { %997 = vst.msk [vmem:[#allocation2] sm:$0xff] %vm996_vm3, %v990_v6  ;;  %v993_v9 = vadd.f32 %v3256_v4, %v992_v8  ;;  %v3494_v10 = vpop.f32.mrb[3].mxu0 }
 0x113   : > { %998 = vst.msk [vmem:[#allocation2 + $0x8] sm:$0xff] %vm996_vm3, %v993_v9 }
 0x114 PF: > { %s4478_s5 = sld [smem:[#allocation11_spill]]  ;;  %v3824_v13 = vmov 0   ;;  %v3659_v18 = vld [vmem:[%s3977_s22 + $0x4] ss:$16 sps:$4 sm:$0xff]   ;;  %v3657_v19 = vld [vmem:[%s3977_s22] ss:$16 sps:$4 sm:$0xff]   ;;  %v1012_v40 = vlaneseq  ;;  %s4479_s28 = scalar_lea.vmem %s4428_s7, %s3963_s26 }
 0x115   : > { %1108 = vmatprep.mubr.bf16.mxu0 %v3824_v13  ;;  %1151 = vmatprep.mubr.bf16.mxu1 %v3824_v13  ;;  %vm1072_vm4 = vcmask 261120   ;;  %v3662_v23 = vld [vmem:[%s3977_s22 + $0x24] ss:$16 sps:$4 sm:$0xff]   ;;  %v3671_v26 = vld [vmem:[%s3977_s22 + $0xc] ss:$16 sps:$4 sm:$0xff]   ;;  %v3825_v39 = vmov 0.0   ;;  %s4484_s10 = scalar_lea.vmem %s4432_s11, %s3959_s25  ;;  %s4485_s23 = scalar_lea.vmem %s4433_s12, %s3959_s25 }
 0x116   : > { %v3660_v27 = vld [vmem:[%s3977_s22 + $0x20] ss:$16 sps:$4 sm:$0xff]   ;;  %v3669_v28 = vld [vmem:[%s3977_s22 + $0x8] ss:$16 sps:$4 sm:$0xff]   ;;  %v3674_v29 = vld [vmem:[%s3977_s22 + $0x2c] ss:$16 sps:$4 sm:$0xff]   ;;  %s4487_s29 = scalar_lea.vmem %s4436_s15, %s3959_s25 }
 0x117   : > { %v3677_v30 = vld [vmem:[%s3986_s4 + $0x4] ss:$16 sps:$4 sm:$0xff]   ;;  %v3675_v31 = vld [vmem:[%s3986_s4] ss:$16 sps:$4 sm:$0xff]   ;;  %v3672_v32 = vld [vmem:[%s3977_s22 + $0x28] ss:$16 sps:$4 sm:$0xff]  }
 0x118   : > { %v999_v16 = vld [vmem:[#allocation2] sm:$0xff]  ;;  %v3683_v35 = vld [vmem:[%s3986_s4 + $0x24] ss:$16 sps:$4 sm:$0xff]   ;;  %v3681_v36 = vld [vmem:[%s3986_s4 + $0x20] ss:$16 sps:$4 sm:$0xff]   ;;  %vm3826_vm5 = vmmov 0  }
 0x119   : > { %v3680_v33 = vld [vmem:[%s3986_s4 + $0xc] ss:$16 sps:$4 sm:$0xff]   ;;  %v3678_v34 = vld [vmem:[%s3986_s4 + $0x8] ss:$16 sps:$4 sm:$0xff]   ;;  %v1013_v41 = vshrl.u32 %v1012_v40, 7  ;;  %s4480_s21 = sld [smem:[#allocation17_spill]] }
 0x11a   : > { %v3651_v11 = vld [vmem:[%s4478_s5 + $0x4] ss:$16 sps:$4 sm:$0xff]   ;;  %v3653_v12 = vld [vmem:[%s4478_s5] ss:$16 sps:$4 sm:$0xff]   ;;  %v3663_v21 = vld [vmem:[%s4478_s5 + $0xc] ss:$16 sps:$4 sm:$0xff]  }
 0x11b   : > { %1076 = vmatprep.subr.bf16.mxu0 %v3651_v11  ;;  %v3654_v14 = vld [vmem:[%s4478_s5 + $0x24] ss:$16 sps:$4 sm:$0xff]   ;;  %v3656_v15 = vld [vmem:[%s4478_s5 + $0x20] ss:$16 sps:$4 sm:$0xff]   ;;  %v3665_v22 = vld [vmem:[%s4478_s5 + $0x8] ss:$16 sps:$4 sm:$0xff]   ;;  %1119 = vmatprep.subr.bf16.mxu1 %v3663_v21 }
 0x11c   : > { %1077 = vmatpush1.bf16.msra.mxu0 %v3653_v12  ;;  %v1000_v17 = vld [vmem:[#allocation2 + $0x8] sm:$0xff]  ;;  %v3666_v24 = vld [vmem:[%s4478_s5 + $0x2c] ss:$16 sps:$4 sm:$0xff]   ;;  %1120 = vmatpush1.bf16.msra.mxu1 %v3665_v22  ;;  %v3668_v25 = vld [vmem:[%s4478_s5 + $0x28] ss:$16 sps:$4 sm:$0xff]   ;;  %v1014_v44 = vsub.s32 0, %v1013_v41 }
 0x11d   : > { %1078 = vmatprep.subr.bf16.mxu0 %v3654_v14  ;;  %v1001_v20 = vpack.c.bf16 %v1000_v17, %v999_v16  ;;  %1121 = vmatprep.subr.bf16.mxu1 %v3666_v24  ;;  %v3686_v37 = vld [vmem:[%s3986_s4 + $0x2c] ss:$16 sps:$4 sm:$0xff]   ;;  %v3684_v38 = vld [vmem:[%s3986_s4 + $0x28] ss:$16 sps:$4 sm:$0xff]   ;;  %v1182_v46 = vld [vmem:[%s4479_s28] sm:$0xf]  ;;  %s4486_s4 = scalar_lea.vmem %s4434_s13, %s3959_s25 }
 0x11e   : > { %v4100_v49 = vsub.s32 1, %v1013_v41  ;;  %v1187_v50 = vrot.slane %v1182_v46, %v1014_v44  ;;  %v4110_v59 = vsub.s32 2, %v1013_v41  ;;  %v4116_v0 = vsub.s32 3, %v1013_v41  ;;  %s4482_s8 = sld [smem:[#allocation20_spill]] }
 0x11f   : > { %s4481_s24 = scalar_lea.vmem %s4480_s21, %s3963_s26  ;;  %vm1621_vm6 = vcmask 1043456   ;;  %vm1593_vm7 = vcmask 64512   ;;  %vm2870_vm8 = vcmask 523264  }
 0x120   : > { %1079 = vmatpush1.bf16.msra.mxu0 %v3656_v15  ;;  %1122 = vmatpush1.bf16.msra.mxu1 %v3668_v25  ;;  %v4096_v47 = vld [vmem:[%s4481_s24] sm:$0xf]  ;;  %v1191_v52 = vrot.slane %v1182_v46, %v4100_v49  ;;  %v1195_v4 = vrot.slane %v1182_v46, %v4110_v59  ;;  %v1199_v7 = vrot.slane %v1182_v46, %v4116_v0 }
 0x121   : > { %1244 = vmatprep.subr.bf16.mxu0 %v3659_v18  ;;  %1287 = vmatprep.subr.bf16.mxu1 %v3671_v26  ;;  %v1015_v51 = vrot.slane %v4096_v47, %v1014_v44 }
 0x123   : > { %3267 = vmatmul.mubr.msk.bf16.vlgmr.msra.gmra.mrb[0].mxu0 %vm1072_vm4, %v1001_v20  ;;  %3268 = vmatmul.mubr.msk.bf16.vlgmr.msra.gmra.mrb[0].mxu1 %vm1072_vm4, %v1001_v20 }
 0x124   : > { %1245 = vmatpush1.bf16.msra.mxu0 %v3657_v19  ;;  %1276 = vmatprep.mubr.bf16.mxu0 %v3824_v13  ;;  %s4483_s6 = scalar_lea.vmem %s4482_s8, %s3963_s26 }
 0x125   : > { %1246 = vmatprep.subr.bf16.mxu0 %v3662_v23  ;;  %1288 = vmatpush1.bf16.msra.mxu1 %v3669_v28  ;;  %v1342_v21 = vld [vmem:[%s4483_s6] sm:$0xf]  ;;  %s4489_s6 = sld [smem:[#allocation7_spill]] }
 0x126   : > { %1319 = vmatprep.mubr.bf16.mxu1 %v3824_v13  ;;  %1289 = vmatprep.subr.bf16.mxu1 %v3674_v29  ;;  %v1347_v22 = vrot.slane %v1342_v21, %v1014_v44  ;;  %v1351_v23 = vrot.slane %v1342_v21, %v4100_v49  ;;  %v1355_v24 = vrot.slane %v1342_v21, %v4110_v59 }
 0x127   : > { %v1359_v26 = vrot.slane %v1342_v21, %v4116_v0 }
 0x128   : > { %1247 = vmatpush1.bf16.msra.mxu0 %v3660_v27 }
 0x129   : > { %1404 = vmatprep.subr.bf16.mxu0 %v3677_v30  ;;  %1290 = vmatpush1.bf16.msra.mxu1 %v3672_v32 }
 0x12a   : > { %1447 = vmatprep.subr.bf16.mxu1 %v3680_v33 }
 0x12b   : > { %3277 = vmatmul.mubr.msk.bf16.vlgmr.msra.gmra.mrb[4].mxu0 %vm1072_vm4, %v1001_v20  ;;  %p3368_p6 = scmp.ne.s32.totalorder %s4489_s6, 1 }
 0x12c   : > { %1405 = vmatpush1.bf16.msra.mxu0 %v3675_v31  ;;  %1436 = vmatprep.mubr.bf16.mxu0 %v3824_v13 }
 0x12d   : > { %3278 = vmatmul.mubr.msk.bf16.vlgmr.msra.gmra.mrb[4].mxu1 %vm1072_vm4, %v1001_v20  ;;  %1406 = vmatprep.subr.bf16.mxu0 %v3683_v35 }
 0x12e   : > { %1479 = vmatprep.mubr.bf16.mxu1 %v3824_v13  ;;  %1448 = vmatpush1.bf16.msra.mxu1 %v3678_v34 }
 0x12f   : > { %1449 = vmatprep.subr.bf16.mxu1 %v3686_v37 }
 0x130   : > { %1407 = vmatpush1.bf16.msra.mxu0 %v3681_v36 }
 0x131   : > { %3495 = vmatprep.subr.bf16.mxu0 %v3825_v39 }
 0x132   : > { %1450 = vmatpush1.bf16.msra.mxu1 %v3684_v38 }
 0x133   : > { %3287 = vmatmul.mubr.msk.bf16.vlgmr.msra.gmra.mrb[8].mxu0 %vm1072_vm4, %v1001_v20  ;;  %3501 = vmatprep.subr.bf16.mxu1 %v3825_v39 }
 0x134   : > { %3497 = vmatprep.mubr.msk.bf16.mxu0 %vm3826_vm5, %v3825_v39 }
 0x135   : > { %3288 = vmatmul.mubr.msk.bf16.vlgmr.msra.gmra.mrb[8].mxu1 %vm1072_vm4, %v1001_v20 }
 0x136   : > { %3503 = vmatprep.mubr.msk.bf16.mxu1 %vm3826_vm5, %v3825_v39 }
 0x1f6   : > { %v1110_v42 = vpop.f32.mrb[0].mxu0  ;;  %v4104_v53 = vpop.f32.mrb[0].mxu1 }
 0x1f7   : > { %v4084_v43 = vpop.f32.mrb[1].mxu0  ;;  %v4106_v54 = vpop.f32.mrb[1].mxu1  ;;  %v1111_v61 = vadd.f32 %v1110_v42, %v1015_v51 }
 0x1f8   : > { %v1114_v45 = vpop.f32.mrb[2].mxu0  ;;  %v4108_v56 = vpop.f32.mrb[2].mxu1 }
 0x1f9   : > { %v4098_v48 = vpop.f32.mrb[3].mxu0  ;;  %v4112_v60 = vpop.f32.mrb[3].mxu1  ;;  %v1115_v5 = vadd.f32 %v1114_v45, %v1015_v51  ;;  %v1162_v9 = vmul.f32 0.35355338, %v1111_v61 }
 0x1fb   : > { %v1166_v13 = vmul.f32 0.35355338, %v1115_v5  ;;  %v3379_v18 = vpack.c.bf16 %v1162_v9, %v1162_v9 }
 0x1fd   : > { %v3380_v20 = vpack.c.bf16 %v1166_v13, %v1166_v13 }
 0x1fe   : > { %v1278_v55 = vpop.f32.mrb[4].mxu0 }
 0x1ff   : > { %v1279_v57 = vadd.f32 %v1278_v55, %v1187_v50  ;;  %v1280_v58 = vpop.f32.mrb[5].mxu0 }
 0x200   : > { %v4114_v62 = vadd.f32 %v1280_v58, %v1191_v52  ;;  %v1282_v63 = vpop.f32.mrb[6].mxu0  ;;  %v1321_v10 = vpop.f32.mrb[4].mxu1 }
 0x201   : > { %v3381_v1 = vpack.c.bf16 %v1279_v57, %v1279_v57  ;;  %v1283_v2 = vadd.f32 %v1282_v63, %v1187_v50  ;;  %v1284_v3 = vpop.f32.mrb[7].mxu0  ;;  %v4123_v11 = vadd.f32 %v1321_v10, %v1195_v4  ;;  %v1323_v12 = vpop.f32.mrb[5].mxu1 }
 0x202   : > { %v4119_v6 = vadd.f32 %v1284_v3, %v1191_v52  ;;  %v4125_v14 = vadd.f32 %v1323_v12, %v1199_v7  ;;  %v1325_v15 = vpop.f32.mrb[6].mxu1 }
 0x203   : > { %v3382_v8 = vpack.c.bf16 %v1283_v2, %v1283_v2  ;;  %3496 = vmatpush3.bf16.xpose.msra.mxu0 %v3381_v1  ;;  %v4128_v16 = vadd.f32 %v1325_v15, %v1195_v4  ;;  %v1327_v17 = vpop.f32.mrb[7].mxu1 }
 0x204   : > { %3507 = vmatprep.subr.bf16.mxu0 %v3825_v39  ;;  %v4130_v19 = vadd.f32 %v1327_v17, %v1199_v7 }
 0x205   : > { %3502 = vmatpush3.bf16.xpose.msra.mxu1 %v3382_v8 }
 0x206   : > { %3513 = vmatprep.subr.bf16.mxu1 %v3825_v39  ;;  %v1438_v25 = vpop.f32.mrb[8].mxu0 }
 0x207   : > { %v1439_v27 = vadd.f32 %v1438_v25, %v1347_v22  ;;  %v1440_v28 = vpop.f32.mrb[9].mxu0 }
 0x208   : > { %v1441_v29 = vadd.f32 %v1440_v28, %v1351_v23  ;;  %v1442_v30 = vpop.f32.mrb[10].mxu0  ;;  %v1481_v31 = vpop.f32.mrb[8].mxu1 }
 0x209   : > { %v3383_v32 = vpack.c.bf16 %v1439_v27, %v1439_v27  ;;  %v1443_v33 = vadd.f32 %v1442_v30, %v1347_v22  ;;  %v1444_v34 = vpop.f32.mrb[11].mxu0  ;;  %v1482_v35 = vadd.f32 %v1481_v31, %v1355_v24  ;;  %v1483_v36 = vpop.f32.mrb[9].mxu1 }
 0x20a   : > { %3498 = vmatmul.mubr.bf16.vlgmr.msra.gmra.mrb[12].mxu0 %v3379_v18  ;;  %v3389_v37 = vpack.c.bf16 %v1441_v29, %v1441_v29  ;;  %v1445_v38 = vadd.f32 %v1444_v34, %v1351_v23  ;;  %v1484_v40 = vadd.f32 %v1483_v36, %v1359_v26  ;;  %v1485_v41 = vpop.f32.mrb[10].mxu1 }
 0x20b   : > { %3509 = vmatprep.mubr.msk.bf16.mxu0 %vm3826_vm5, %v3825_v39  ;;  %v1623_v42 = vsel %vm1621_vm6, %v3383_v32, 0  ;;  %v3384_v44 = vpack.c.bf16 %v1443_v33, %v1443_v33  ;;  %v3395_v45 = vpack.c.bf16 %v1482_v35, %v1482_v35  ;;  %v1486_v46 = vadd.f32 %v1485_v41, %v1355_v24  ;;  %v1487_v50 = vpop.f32.mrb[11].mxu1 }
 0x20c   : > { %3504 = vmatmul.mubr.bf16.vlgmr.msra.gmra.mrb[12].mxu1 %v3380_v20  ;;  %v4146_v51 = vsel %vm1621_vm6, %v3389_v37, 0  ;;  %v3390_v52 = vpack.c.bf16 %v1445_v38, %v1445_v38  ;;  %v3401_v55 = vpack.c.bf16 %v1484_v40, %v1484_v40  ;;  %v1488_v57 = vadd.f32 %v1487_v50, %v1359_v26  ;;  %3508 = vmatpush3.bf16.msra.mxu0 %v1623_v42 }
 0x20d   : > { %3515 = vmatprep.mubr.msk.bf16.mxu1 %vm3826_vm5, %v3825_v39  ;;  %v1669_v58 = vsel %vm1621_vm6, %v3384_v44, 0  ;;  %v4150_v61 = vsel %vm1621_vm6, %v3395_v45, 0  ;;  %v3396_v63 = vpack.c.bf16 %v1486_v46, %v1486_v46  ;;  %3519 = vmatprep.subr.bf16.mxu0 %v3825_v39  ;;  %v1019_v33 = vrot.slane %v4096_v47, %v4100_v49 }
 0x20e   : > { %v4154_v1 = vsel %vm1621_vm6, %v3390_v52, 0  ;;  %v4157_v2 = vsel %vm1621_vm6, %v3401_v55, 0  ;;  %v3402_v3 = vpack.c.bf16 %v1488_v57, %v1488_v57  ;;  %3514 = vmatpush3.bf16.msra.mxu1 %v1669_v58  ;;  %v3387_v40 = vpack.c.bf16 %v4114_v62, %v4114_v62 }
 0x20f   : > { %v4160_v4 = vsel %vm1621_vm6, %v3396_v63, 0  ;;  %3525 = vmatprep.subr.bf16.mxu1 %v3825_v39  ;;  %v1113_v36 = vadd.f32 %v4084_v43, %v1019_v33  ;;  %v1117_v44 = vadd.f32 %v4098_v48, %v1019_v33  ;;  %v3388_v43 = vpack.c.bf16 %v4119_v6, %v4119_v6 }
 0x210   : > { %v4164_v5 = vsel %vm1621_vm6, %v3402_v3, 0 }
 0x211   : > { %v1163_v42 = vmul.f32 0.35355338, %v1113_v36  ;;  %v1167_v45 = vmul.f32 0.35355338, %v1117_v44 }
 0x213   : > { %v3385_v62 = vpack.c.bf16 %v1163_v42, %v1163_v42  ;;  %v3386_v48 = vpack.c.bf16 %v1167_v45, %v1167_v45 }
 0x2dd   : > { %v1547_v7 = vpop.f32.mrb[12].mxu0 }
 0x2de   : > { %v3499_v8 = vpop.f32.mrb[13].mxu0  ;;  %v1594_v9 = vsel %vm1593_vm7, %v1547_v7, -inf }
 0x2df   : > { %v1587_v10 = vpop.f32.mrb[12].mxu1  ;;  %1595 = vmax.xlane.f32.xlu0 %v1594_v9  ;;  %v1550_v12 = vpop.f32.mrb[14].mxu0 }
 0x2e0   : > { %v3500_v13 = vpop.f32.mrb[15].mxu0  ;;  %v3505_v15 = vpop.f32.mrb[13].mxu1  ;;  %v1597_v20 = vsel %vm1593_vm7, %v1587_v10, -inf }
 0x2e1   : > { %v1590_v17 = vpop.f32.mrb[14].mxu1 }
 0x2e2   : > { %v3506_v18 = vpop.f32.mrb[15].mxu1 }
 0x2e3   : > { %1598 = vmax.xlane.f32.xlu0 %v1597_v20 }
 0x36c   : > { %v1596_v21 = vpop.xlane.xlu0 %1595 }
 0x36d   : > { %v1600_v22 = vsub.f32 %v1547_v7, %v1596_v21 }
 0x36f   : > { %v1602_v23 = vmul.f32 1.442695, %v1600_v22 }
 0x370   : > { %v1599_v24 = vpop.xlane.xlu0 %1598 }
 0x371   : > { %3725 = vpow2.f32 %v1602_v23  ;;  %v1601_v25 = vsub.f32 %v1587_v10, %v1599_v24 }
 0x373   : > { %v1604_v26 = vmul.f32 1.442695, %v1601_v25 }
 0x375   : > { %3727 = vpow2.f32 %v1604_v26 }
 0x37b   : > { %v3726_v27 = vpop.eup %3725 }
 0x37c   : > { %v1606_v28 = vsel %vm1593_vm7, %v3726_v27, 0.0 }
 0x37d   : > { %1607 = vadd.xlane.f32.xlu1 %v1606_v28 }
 0x37f   : > { %v3728_v29 = vpop.eup %3727 }
 0x380   : > { %v1609_v30 = vsel %vm1593_vm7, %v3728_v29, 0.0 }
 0x381   : > { %1610 = vadd.xlane.f32.xlu1 %v1609_v30 }
 0x40a   : > { %v1608_v31 = vpop.xlane.xlu1 %1607 }
 0x40b   : > { %3729 = vrcp.f32 %v1608_v31  ;;  %v1023_v31 = vrot.slane %v4096_v47, %v4110_v59 }
 0x40e   : > { %v1611_v32 = vpop.xlane.xlu1 %1610 }
 0x40f   : > { %3731 = vrcp.f32 %v1611_v32 }
 0x415   : > { %v3730_v34 = vpop.eup %3729 }
 0x416   : > { %v1614_v35 = vmul.f32 %v3730_v34, %v3726_v27  ;;  %v1154_v34 = vadd.f32 %v4104_v53, %v1023_v31  ;;  %v3394_v53 = vpack.c.bf16 %v4128_v16, %v4128_v16 }
 0x418   : > { %v1616_v37 = vpack.c.bf16 %v1614_v35, %v1614_v35 }
 0x419   : > { %v3732_v38 = vpop.eup %3731 }
 0x41a   : > { %v1615_v41 = vmul.f32 %v3732_v38, %v3728_v29  ;;  %3510 = vmatmul.mubr.msk.bf16.vlgmr.msra.gmra.mrb[16].mxu0 %vm1593_vm7, %v1616_v37  ;;  %v3393_v37 = vpack.c.bf16 %v4123_v11, %v4123_v11 }
 0x41b   : > { %3520 = vmatpush3.bf16.xpose.msra.mxu0 %v3387_v40  ;;  %3521 = vmatprep.mubr.msk.bf16.mxu0 %vm3826_vm5, %v3825_v39  ;;  %v1164_v40 = vmul.f32 0.35355338, %v1154_v34 }
 0x41c   : > { %v1617_v49 = vpack.c.bf16 %v1615_v41, %v1615_v41  ;;  %3531 = vmatprep.subr.bf16.mxu0 %v3825_v39  ;;  %v1158_v41 = vadd.f32 %v4108_v56, %v1023_v31  ;;  %v3399_v31 = vpack.c.bf16 %v4125_v14, %v4125_v14 }
 0x41d   : > { %v3391_v11 = vpack.c.bf16 %v1164_v40, %v1164_v40 }
 0x41e   : > { %3516 = vmatmul.mubr.msk.bf16.vlgmr.msra.gmra.mrb[16].mxu1 %vm1593_vm7, %v1617_v49  ;;  %v1168_v42 = vmul.f32 0.35355338, %v1158_v41 }
 0x41f   : > { %3526 = vmatpush3.bf16.xpose.msra.mxu1 %v3388_v43  ;;  %3527 = vmatprep.mubr.msk.bf16.mxu1 %vm3826_vm5, %v3825_v39 }
 0x420   : > { %3537 = vmatprep.subr.bf16.mxu1 %v3825_v39  ;;  %v3392_v56 = vpack.c.bf16 %v1168_v42, %v1168_v42 }
 0x422   : > { %3522 = vmatmul.mubr.bf16.vlgmr.msra.gmra.mrb[20].mxu0 %v3385_v62 }
 0x423   : > { %3532 = vmatpush3.bf16.msra.mxu0 %v4146_v51  ;;  %3533 = vmatprep.mubr.msk.bf16.mxu0 %vm3826_vm5, %v3825_v39 }
 0x424   : > { %3543 = vmatprep.subr.bf16.mxu0 %v3825_v39 }
 0x426   : > { %3528 = vmatmul.mubr.bf16.vlgmr.msra.gmra.mrb[20].mxu1 %v3386_v48 }
 0x427   : > { %3538 = vmatpush3.bf16.msra.mxu1 %v4154_v1  ;;  %3539 = vmatprep.mubr.msk.bf16.mxu1 %vm3826_vm5, %v3825_v39 }
 0x428   : > { %3549 = vmatprep.subr.bf16.mxu1 %v3825_v39 }
 0x4ed   : > { %v4194_v6 = vpop.f32.mrb[16].mxu0 }
 0x4ee   : > { %v3511_v46 = vpop.f32.mrb[17].mxu0 }
 0x4ef   : > { %v1662_v50 = vpop.f32.mrb[18].mxu0 }
 0x4f0   : > { %v3512_v52 = vpop.f32.mrb[19].mxu0 }
 0x4f1   : > { %v4196_v51 = vpop.f32.mrb[16].mxu1 }
 0x4f2   : > { %v1711_v55 = vpack.c.bf16 %v4196_v51, %v4194_v6  ;;  %v3517_v57 = vpop.f32.mrb[17].mxu1 }
 0x4f3   : > { %v1708_v58 = vpop.f32.mrb[18].mxu1 }
 0x4f4   : > { %v3518_v63 = vpop.f32.mrb[19].mxu1 }
 0x4f5   : > { %v1766_v3 = vpop.f32.mrb[20].mxu0 }
 0x4f6   : > { %v3523_v1 = vpop.f32.mrb[21].mxu0  ;;  %v1812_v7 = vsel %vm1593_vm7, %v1766_v3, -inf }
 0x4f7   : > { %1813 = vmax.xlane.f32.xlu0 %v1812_v7  ;;  %v1769_v8 = vpop.f32.mrb[22].mxu0 }
 0x4f8   : > { %v3524_v9 = vpop.f32.mrb[23].mxu0 }
 0x4f9   : > { %v1806_v10 = vpop.f32.mrb[20].mxu1 }
 0x4fa   : > { %v3529_v12 = vpop.f32.mrb[21].mxu1  ;;  %v1815_v13 = vsel %vm1593_vm7, %v1806_v10, -inf }
 0x4fb   : > { %1816 = vmax.xlane.f32.xlu1 %v1815_v13  ;;  %v1809_v15 = vpop.f32.mrb[22].mxu1 }
 0x4fc   : > { %v3530_v17 = vpop.f32.mrb[23].mxu1 }
 0x584   : > { %v1814_v18 = vpop.xlane.xlu0 %1813 }
 0x585   : > { %v1818_v20 = vsub.f32 %v1766_v3, %v1814_v18 }
 0x587   : > { %v1820_v21 = vmul.f32 1.442695, %v1818_v20 }
 0x588   : > { %v1817_v22 = vpop.xlane.xlu1 %1816 }
 0x589   : > { %3733 = vpow2.f32 %v1820_v21  ;;  %v1819_v23 = vsub.f32 %v1806_v10, %v1817_v22 }
 0x58b   : > { %v1822_v24 = vmul.f32 1.442695, %v1819_v23 }
 0x58d   : > { %3735 = vpow2.f32 %v1822_v24 }
 0x593   : > { %v3734_v25 = vpop.eup %3733 }
 0x594   : > { %v1824_v26 = vsel %vm1593_vm7, %v3734_v25, 0.0 }
 0x595   : > { %1825 = vadd.xlane.f32.xlu0 %v1824_v26 }
 0x597   : > { %v3736_v27 = vpop.eup %3735 }
 0x598   : > { %v1827_v28 = vsel %vm1593_vm7, %v3736_v27, 0.0 }
 0x599   : > { %1828 = vadd.xlane.f32.xlu1 %v1827_v28 }
 0x622   : > { %v1826_v29 = vpop.xlane.xlu0 %1825 }
 0x623   : > { %3737 = vrcp.f32 %v1826_v29 }
 0x626   : > { %v1829_v30 = vpop.xlane.xlu1 %1828 }
 0x627   : > { %3739 = vrcp.f32 %v1829_v30 }
 0x62d   : > { %v3738_v32 = vpop.eup %3737 }
 0x62e   : > { %v1832_v33 = vmul.f32 %v3738_v32, %v3734_v25  ;;  %v1027_v25 = vrot.slane %v4096_v47, %v4116_v0 }
 0x630   : > { %v1834_v35 = vpack.c.bf16 %v1832_v33, %v1832_v33  ;;  %v1156_v28 = vadd.f32 %v4106_v54, %v1027_v25  ;;  %v1160_v34 = vadd.f32 %v4112_v60, %v1027_v25  ;;  %v3400_v54 = vpack.c.bf16 %v4130_v19, %v4130_v19 }
 0x631   : > { %v3740_v36 = vpop.eup %3739 }
 0x632   : > { %v1833_v38 = vmul.f32 %v3740_v36, %v3736_v27  ;;  %3534 = vmatmul.mubr.msk.bf16.vlgmr.msra.gmra.mrb[24].mxu0 %vm1593_vm7, %v1834_v35  ;;  %v1165_v33 = vmul.f32 0.35355338, %v1156_v28  ;;  %v1169_v14 = vmul.f32 0.35355338, %v1160_v34  ;;  %v3692_v28 = vld [vmem:[%s4000_s20 + $0x10] sm:$0xff]   ;;  %v3710_v34 = vld [vmem:[%s4000_s20 + $0x98] sm:$0xff]  }
 0x633   : > { %3544 = vmatpush3.bf16.xpose.msra.mxu0 %v3393_v37  ;;  %3545 = vmatprep.mubr.msk.bf16.mxu0 %vm3826_vm5, %v3825_v39 }
 0x634   : > { %v1835_v59 = vpack.c.bf16 %v1833_v38, %v1833_v38  ;;  %3555 = vmatprep.subr.bf16.mxu0 %v3825_v39  ;;  %v3397_v0 = vpack.c.bf16 %v1165_v33, %v1165_v33  ;;  %v3398_v60 = vpack.c.bf16 %v1169_v14, %v1169_v14  ;;  %v3696_v33 = vld [vmem:[%s4000_s20 + $0x20] sm:$0xff]  }
 0x635   : > { %v3712_v14 = vld [vmem:[%s4000_s20 + $0xa0] sm:$0xff]  }
 0x636   : > { %3540 = vmatmul.mubr.msk.bf16.vlgmr.msra.gmra.mrb[24].mxu1 %vm1593_vm7, %v1835_v59 }
 0x637   : > { %3550 = vmatpush3.bf16.xpose.msra.mxu1 %v3394_v53  ;;  %3551 = vmatprep.mubr.msk.bf16.mxu1 %vm3826_vm5, %v3825_v39 }
 0x638   : > { %3561 = vmatprep.subr.bf16.mxu1 %v3825_v39 }
 0x63a   : > { %3546 = vmatmul.mubr.bf16.vlgmr.msra.gmra.mrb[28].mxu0 %v3391_v11 }
 0x63b   : > { %3556 = vmatpush3.bf16.msra.mxu0 %v4150_v61  ;;  %3557 = vmatprep.mubr.msk.bf16.mxu0 %vm3826_vm5, %v3825_v39 }
 0x63c   : > { %3567 = vmatprep.subr.bf16.mxu0 %v3825_v39 }
 0x63e   : > { %3552 = vmatmul.mubr.bf16.vlgmr.msra.gmra.mrb[28].mxu1 %v3392_v56 }
 0x63f   : > { %3562 = vmatpush3.bf16.msra.mxu1 %v4160_v4  ;;  %3563 = vmatprep.mubr.msk.bf16.mxu1 %vm3826_vm5, %v3825_v39 }
 0x640   : > { %3573 = vmatprep.subr.bf16.mxu1 %v3825_v39 }
 0x705   : > { %v4228_v16 = vpop.f32.mrb[24].mxu0 }
 0x706   : > { %v3535_v44 = vpop.f32.mrb[25].mxu0 }
 0x707   : > { %v1879_v49 = vpop.f32.mrb[26].mxu0 }
 0x708   : > { %v3536_v43 = vpop.f32.mrb[27].mxu0 }
 0x709   : > { %v4230_v61 = vpop.f32.mrb[24].mxu1 }
 0x70a   : > { %v1928_v62 = vpack.c.bf16 %v4230_v61, %v4228_v16  ;;  %v3541_v45 = vpop.f32.mrb[25].mxu1  ;;  %v3693_v16 = vld [vmem:[%s4000_s20 + $0x58] sm:$0xff]   ;;  %v3707_v61 = vld [vmem:[%s4000_s20 + $0xd0] sm:$0xff]  }
 0x70b   : > { %v1925_v48 = vpop.f32.mrb[26].mxu1 }
 0x70c   : > { %v3542_v46 = vpop.f32.mrb[27].mxu1 }
 0x70d   : > { %v1983_v50 = vpop.f32.mrb[28].mxu0 }
 0x70e   : > { %v3547_v4 = vpop.f32.mrb[29].mxu0  ;;  %v2029_v52 = vsel %vm1593_vm7, %v1983_v50, -inf }
 0x70f   : > { %2030 = vmax.xlane.f32.xlu0 %v2029_v52  ;;  %v1986_v57 = vpop.f32.mrb[30].mxu0 }
 0x710   : > { %v3548_v58 = vpop.f32.mrb[31].mxu0 }
 0x711   : > { %v2023_v63 = vpop.f32.mrb[28].mxu1 }
 0x712   : > { %v3553_v3 = vpop.f32.mrb[29].mxu1  ;;  %v2032_v1 = vsel %vm1593_vm7, %v2023_v63, -inf }
 0x713   : > { %2033 = vmax.xlane.f32.xlu1 %v2032_v1  ;;  %v2026_v7 = vpop.f32.mrb[30].mxu1 }
 0x714   : > { %v3554_v8 = vpop.f32.mrb[31].mxu1 }
 0x715   : > { %v3687_v8 = vld [vmem:[%s4000_s20 + $0x40] sm:$0xff]  }
 0x79c   : > { %v2031_v9 = vpop.xlane.xlu0 %2030 }
 0x79d   : > { %v2035_v10 = vsub.f32 %v1983_v50, %v2031_v9  ;;  %v3703_v9 = vld [vmem:[%s4000_s20 + $0xc0] sm:$0xff]  }
 0x79f   : > { %v2037_v12 = vmul.f32 1.442695, %v2035_v10 }
 0x7a0   : > { %v2034_v13 = vpop.xlane.xlu1 %2033 }
 0x7a1   : > { %3741 = vpow2.f32 %v2037_v12  ;;  %v2036_v15 = vsub.f32 %v2023_v63, %v2034_v13 }
 0x7a3   : > { %v2039_v17 = vmul.f32 1.442695, %v2036_v15 }
 0x7a5   : > { %3743 = vpow2.f32 %v2039_v17  ;;  %v3688_v17 = vld [vmem:[%s4000_s20] sm:$0xff]  }
 0x7ab   : > { %v3742_v18 = vpop.eup %3741 }
 0x7ac   : > { %v2041_v20 = vsel %vm1593_vm7, %v3742_v18, 0.0 }
 0x7ad   : > { %2042 = vadd.xlane.f32.xlu0 %v2041_v20  ;;  %v3689_v20 = vld [vmem:[%s4000_s20 + $0x48] sm:$0xff]  }
 0x7af   : > { %v3744_v21 = vpop.eup %3743 }
 0x7b0   : > { %v2044_v22 = vsel %vm1593_vm7, %v3744_v21, 0.0 }
 0x7b1   : > { %2045 = vadd.xlane.f32.xlu1 %v2044_v22 }
 0x83a   : > { %v2043_v23 = vpop.xlane.xlu0 %2042 }
 0x83b   : > { %3745 = vrcp.f32 %v2043_v23  ;;  %v3690_v23 = vld [vmem:[%s4000_s20 + $0x8] sm:$0xff]  }
 0x83e   : > { %v2046_v24 = vpop.xlane.xlu1 %2045 }
 0x83f   : > { %3747 = vrcp.f32 %v2046_v24  ;;  %v3704_v24 = vld [vmem:[%s4000_s20 + $0x80] sm:$0xff]  }
 0x845   : > { %v3746_v26 = vpop.eup %3745 }
 0x846   : > { %v2049_v27 = vmul.f32 %v3746_v26, %v3742_v18  ;;  %v3691_v26 = vld [vmem:[%s4000_s20 + $0x50] sm:$0xff]  }
 0x848   : > { %v2051_v29 = vpack.c.bf16 %v2049_v27, %v2049_v27  ;;  %v3705_v27 = vld [vmem:[%s4000_s20 + $0xc8] sm:$0xff]  }
 0x849   : > { %v3748_v30 = vpop.eup %3747 }
 0x84a   : > { %v2050_v32 = vmul.f32 %v3748_v30, %v3744_v21  ;;  %3558 = vmatmul.mubr.msk.bf16.vlgmr.msra.gmra.mrb[32].mxu0 %vm1593_vm7, %v2051_v29  ;;  %v3706_v29 = vld [vmem:[%s4000_s20 + $0x88] sm:$0xff]   ;;  %v3708_v30 = vld [vmem:[%s4000_s20 + $0x90] sm:$0xff]  }
 0x84b   : > { %3568 = vmatpush3.bf16.xpose.msra.mxu0 %v3399_v31  ;;  %3569 = vmatprep.mubr.msk.bf16.mxu0 %vm3826_vm5, %v3825_v39  ;;  %v3695_v31 = vld [vmem:[%s4000_s20 + $0x60] sm:$0xff]  }
 0x84c   : > { %v2052_v47 = vpack.c.bf16 %v2050_v32, %v2050_v32  ;;  %3579 = vmatprep.subr.bf16.mxu0 %v3825_v39  ;;  %v3709_v32 = vld [vmem:[%s4000_s20 + $0xd8] sm:$0xff]  }
 0x84e   : > { %3564 = vmatmul.mubr.msk.bf16.vlgmr.msra.gmra.mrb[32].mxu1 %vm1593_vm7, %v2052_v47  ;;  %v3697_v47 = vld [vmem:[%s4000_s20 + $0x68] sm:$0xff]  }
 0x84f   : > { %3574 = vmatpush3.bf16.xpose.msra.mxu1 %v3400_v54  ;;  %3575 = vmatprep.mubr.msk.bf16.mxu1 %vm3826_vm5, %v3825_v39  ;;  %v3711_v54 = vld [vmem:[%s4000_s20 + $0xe0] sm:$0xff]  }
 0x850   : > { %3585 = vmatprep.subr.bf16.mxu1 %v3825_v39 }
 0x852   : > { %3570 = vmatmul.mubr.bf16.vlgmr.msra.gmra.mrb[36].mxu0 %v3397_v0  ;;  %v3698_v0 = vld [vmem:[%s4000_s20 + $0x28] sm:$0xff]  }
 0x853   : > { %3580 = vmatpush3.bf16.msra.mxu0 %v4157_v2  ;;  %3581 = vmatprep.mubr.msk.bf16.mxu0 %vm3826_vm5, %v3825_v39 }
 0x854   : > { %3437 = vmatprep.subr.bf16.mxu0 %v3687_v8 }
 0x856   : > { %3576 = vmatmul.mubr.bf16.vlgmr.msra.gmra.mrb[36].mxu1 %v3398_v60  ;;  %v3699_v60 = vld [vmem:[%s4000_s20 + $0x70] sm:$0xff]  }
 0x857   : > { %3586 = vmatpush3.bf16.msra.mxu1 %v4164_v5  ;;  %3587 = vmatprep.mubr.msk.bf16.mxu1 %vm3826_vm5, %v3825_v39 }
 0x858   : > { %3459 = vmatprep.subr.bf16.mxu1 %v3703_v9 }
 0x91d   : > { %v4260_v19 = vpop.f32.mrb[32].mxu0 }
 0x91e   : > { %v3559_v35 = vpop.f32.mrb[33].mxu0 }
 0x91f   : > { %v2096_v36 = vpop.f32.mrb[34].mxu0  ;;  %v3713_v35 = vld [vmem:[%s4000_s20 + $0xe8] sm:$0xff]  }
 0x920   : > { %v3560_v37 = vpop.f32.mrb[35].mxu0  ;;  %v3700_v36 = vld [vmem:[%s4000_s20 + $0x30] sm:$0xff]  }
 0x921   : > { %v4262_v38 = vpop.f32.mrb[32].mxu1  ;;  %v3714_v37 = vld [vmem:[%s4000_s20 + $0xa8] sm:$0xff]  }
 0x922   : > { %v2145_v2 = vpack.c.bf16 %v4262_v38, %v4260_v19  ;;  %v3565_v40 = vpop.f32.mrb[33].mxu1 }
 0x923   : > { %v2142_v41 = vpop.f32.mrb[34].mxu1  ;;  %v3701_v40 = vld [vmem:[%s4000_s20 + $0x78] sm:$0xff]  }
 0x924   : > { %v3566_v59 = vpop.f32.mrb[35].mxu1  ;;  %v3702_v41 = vld [vmem:[%s4000_s20 + $0x38] sm:$0xff]  }
 0x925   : > { %v2200_v53 = vpop.f32.mrb[36].mxu0  ;;  %v3715_v59 = vld [vmem:[%s4000_s20 + $0xf0] sm:$0xff]  }
 0x926   : > { %v3571_v11 = vpop.f32.mrb[37].mxu0  ;;  %v2246_v5 = vsel %vm1593_vm7, %v2200_v53, -inf }
 0x927   : > { %2247 = vmax.xlane.f32.xlu0 %v2246_v5  ;;  %v2203_v42 = vpop.f32.mrb[38].mxu0  ;;  %v3717_v11 = vld [vmem:[%s4000_s20 + $0xf8] sm:$0xff]  }
 0x928   : > { %v3572_v56 = vpop.f32.mrb[39].mxu0  ;;  %v3718_v5 = vld [vmem:[%s4000_s20 + $0xb8] sm:$0xff]  }
 0x929   : > { %v2240_v44 = vpop.f32.mrb[36].mxu1 }
 0x92a   : > { %v3577_v49 = vpop.f32.mrb[37].mxu1  ;;  %v2249_v43 = vsel %vm1593_vm7, %v2240_v44, -inf }
 0x92b   : > { %2250 = vmax.xlane.f32.xlu1 %v2249_v43  ;;  %v2243_v45 = vpop.f32.mrb[38].mxu1 }
 0x92c   : > { %v3578_v48 = vpop.f32.mrb[39].mxu1 }
 0x9b4   : > { %v2248_v46 = vpop.xlane.xlu0 %2247 }
 0x9b5   : > { %v2252_v50 = vsub.f32 %v2200_v53, %v2248_v46  ;;  %v3716_v53 = vld [vmem:[%s4000_s20 + $0xb0] sm:$0xff]  }
 0x9b7   : > { %v2254_v4 = vmul.f32 1.442695, %v2252_v50 }
 0x9b8   : > { %v2251_v52 = vpop.xlane.xlu1 %2250 }
 0x9b9   : > { %3749 = vpow2.f32 %v2254_v4  ;;  %v2253_v57 = vsub.f32 %v2240_v44, %v2251_v52 }
 0x9bb   : > { %v2256_v58 = vmul.f32 1.442695, %v2253_v57 }
 0x9bd   : > { %3751 = vpow2.f32 %v2256_v58  ;;  %v3321_v58 = vld [vmem:[%s4484_s10] ss:$0 sm:$0xff] }
 0x9c3   : > { %v3750_v63 = vpop.eup %3749 }
 0x9c4   : > { %v2258_v3 = vsel %vm1593_vm7, %v3750_v63, 0.0 }
 0x9c5   : > { %2259 = vadd.xlane.f32.xlu0 %v2258_v3 }
 0x9c7   : > { %v3752_v1 = vpop.eup %3751 }
 0x9c8   : > { %v2261_v7 = vsel %vm1593_vm7, %v3752_v1, 0.0 }
 0x9c9   : > { %2262 = vadd.xlane.f32.xlu1 %v2261_v7 }
 0xa52   : > { %v2260_v10 = vpop.xlane.xlu0 %2259 }
 0xa53   : > { %3753 = vrcp.f32 %v2260_v10 }
 0xa56   : > { %v2263_v12 = vpop.xlane.xlu1 %2262 }
 0xa57   : > { %3755 = vrcp.f32 %v2263_v12  ;;  %v3765_v12 = vld [vmem:[#allocation2] sm:$0xff] }
 0xa5d   : > { %v3754_v13 = vpop.eup %3753 }
 0xa5e   : > { %v2266_v15 = vmul.f32 %v3754_v13, %v3750_v63 }
 0xa60   : > { %v2268_v18 = vpack.c.bf16 %v2266_v15, %v2266_v15 }
 0xa61   : > { %v3756_v21 = vpop.eup %3755 }
 0xa62   : > { %v2267_v22 = vmul.f32 %v3756_v21, %v3752_v1  ;;  %3582 = vmatmul.mubr.msk.bf16.vlgmr.msra.gmra.mrb[40].mxu0 %vm1593_vm7, %v2268_v18 }
 0xa63   : > { %3438 = vmatpush3.bf16.msra.mxu0 %v3688_v17  ;;  %2663 = vmatprep.mubr.bf16.mxu0 %v1928_v62  ;;  %v3694_v62 = vld [vmem:[%s4000_s20 + $0x18] sm:$0xff]   ;;  %v3766_v17 = vld [vmem:[#allocation2 + $0x8] sm:$0xff]  ;;  %s4490_s20 = sld [smem:[#allocation13_spill]] (!%p3368_p6) }
 0xa64   : > { %3439 = vmatprep.subr.bf16.mxu0 %v3689_v20  ;;  %v2269_v25 = vpack.c.bf16 %v2267_v22, %v2267_v22 }
 0xa66   : > { %3588 = vmatmul.mubr.msk.bf16.vlgmr.msra.gmra.mrb[40].mxu1 %vm1593_vm7, %v2269_v25 }
 0xa67   : > { %3440 = vmatpush3.bf16.msra.mxu0 %v3690_v23  ;;  %3460 = vmatpush3.bf16.msra.mxu1 %v3704_v24 }
 0xa68   : > { %3441 = vmatprep.subr.bf16.mxu0 %v3691_v26  ;;  %3461 = vmatprep.subr.bf16.mxu1 %v3705_v27 }
 0xa6b   : > { %3442 = vmatpush3.bf16.msra.mxu0 %v3692_v28  ;;  %3462 = vmatpush3.bf16.msra.mxu1 %v3706_v29 }
 0xa6c   : > { %3443 = vmatprep.subr.bf16.mxu0 %v3693_v16  ;;  %3463 = vmatprep.subr.bf16.mxu1 %v3707_v61  ;;  %v3719_v61 = vld [vmem:[%s4014_s9] sm:$0xff]  }
 0xa6f   : > { %3444 = vmatpush3.bf16.msra.mxu0 %v3694_v62  ;;  %3464 = vmatpush3.bf16.msra.mxu1 %v3708_v30  ;;  %v3720_v62 = vld [vmem:[%s4014_s9 + $0x8] sm:$0xff]   ;;  %v3721_v30 = vld [vmem:[%s4028_s3] sm:$0xff]  }
 0xa70   : > { %3445 = vmatprep.subr.bf16.mxu0 %v3695_v31  ;;  %3465 = vmatprep.subr.bf16.mxu1 %v3709_v32  ;;  %v3722_v31 = vld [vmem:[%s4028_s3 + $0x8] sm:$0xff]  }
 0xa73   : > { %3446 = vmatpush3.bf16.msra.mxu0 %v3696_v33  ;;  %3466 = vmatpush3.bf16.msra.mxu1 %v3710_v34 }
 0xa74   : > { %3447 = vmatprep.subr.bf16.mxu0 %v3697_v47  ;;  %3467 = vmatprep.subr.bf16.mxu1 %v3711_v54 }
 0xa77   : > { %3448 = vmatpush3.bf16.msra.mxu0 %v3698_v0  ;;  %3468 = vmatpush3.bf16.msra.mxu1 %v3712_v14 }
 0xa78   : > { %3449 = vmatprep.subr.bf16.mxu0 %v3699_v60  ;;  %3469 = vmatprep.subr.bf16.mxu1 %v3713_v35  ;;  %v3354_v60 = vld [vmem:[%s4485_s23] ss:$0 sm:$0xff] }
 0xa7b   : > { %3450 = vmatpush3.bf16.msra.mxu0 %v3700_v36  ;;  %3470 = vmatpush3.bf16.msra.mxu1 %v3714_v37 }
 0xa7c   : > { %3451 = vmatprep.subr.bf16.mxu0 %v3701_v40  ;;  %3471 = vmatprep.subr.bf16.mxu1 %v3715_v59 }
 0xa7f   : > { %3452 = vmatpush3.bf16.msra.mxu0 %v3702_v41  ;;  %3472 = vmatpush3.bf16.msra.mxu1 %v3716_v53  ;;  %v3355_v41 = vld [vmem:[%s4486_s4] ss:$0 sm:$0xff] }
 0xa80   : > { %3591 = vmatprep.subr.bf16.mxu0 %v3825_v39  ;;  %3473 = vmatprep.subr.bf16.mxu1 %v3717_v11 }
 0xa82   : > { %2664 = vmatmul.mubr.bf16.vlgmr.msra.gmra.mrb[44].mxu0 %v1711_v55 }
 0xa83   : > { %3595 = vmatprep.mubr.msk.bf16.mxu0 %vm3826_vm5, %v3825_v39  ;;  %3474 = vmatpush3.bf16.msra.mxu1 %v3718_v5 }
 0xa84   : > { %3599 = vmatprep.subr.bf16.mxu1 %v3825_v39  ;;  %3592 = vmatpush3.bf16.msra.mxu0 %v3719_v61  ;;  %v3367_v61 = vld [vmem:[%s925_s14] ss:$0 sm:$0xff] }
 0xa85   : > { %3593 = vmatprep.subr.bf16.mxu0 %v3825_v39 }
 0xa88   : > { %3594 = vmatpush3.bf16.msra.mxu0 %v3720_v62 }
 0xb35   : > { %v2310_v42 = vpop.f32.mrb[40].mxu0 }
 0xb36   : > { %v3583_v56 = vpop.f32.mrb[41].mxu0 }
 0xb37   : > { %v2313_v44 = vpop.f32.mrb[42].mxu0  ;;  %v3724_v56 = vld [vmem:[%s4028_s3 + $0x18] sm:$0xff]  }
 0xb38   : > { %v3584_v49 = vpop.f32.mrb[43].mxu0  ;;  %v3356_v44 = vld [vmem:[%s4487_s29] ss:$0 sm:$0xff] }
 0xb39   : > { %v2356_v6 = vpop.f32.mrb[40].mxu1 }
 0xb3a   : > { %v2362_v51 = vpack.c.bf16 %v2356_v6, %v2310_v42  ;;  %v3589_v55 = vpop.f32.mrb[41].mxu1  ;;  %v3723_v42 = vld [vmem:[%s4028_s3 + $0x10] sm:$0xff]  }
 0xb3b   : > { %v2359_v43 = vpop.f32.mrb[42].mxu1 }
 0xb3c   : > { %v3590_v45 = vpop.f32.mrb[43].mxu1  ;;  %2704 = vmatprep.mubr.bf16.mxu1 %v2362_v51 }
 0xb3d   : > { %2705 = vmatmul.mubr.bf16.vlgmr.msra.gmra.mrb[44].mxu1 %v2145_v2 }
 0xb3e   : > { %3607 = vmatprep.mubr.msk.bf16.mxu1 %vm3826_vm5, %v3825_v39  ;;  %3600 = vmatpush3.bf16.msra.mxu1 %v3721_v30 }
 0xb3f   : > { %3601 = vmatprep.subr.bf16.mxu1 %v3825_v39 }
 0xb42   : > { %3602 = vmatpush3.bf16.msra.mxu1 %v3722_v31 }
 0xb43   : > { %3603 = vmatprep.subr.bf16.mxu1 %v3825_v39 }
 0xb46   : > { %3604 = vmatpush3.bf16.msra.mxu1 %v3723_v42 }
 0xb47   : > { %3605 = vmatprep.subr.bf16.mxu1 %v3825_v39  ;;  %v3360_v39 = vld [vmem:[%s919_s27] ss:$0 sm:$0xff] }
 0xb4a   : > { %3606 = vmatpush3.bf16.msra.mxu1 %v3724_v56 }
 0xb55   : > { %v3453_v48 = vpop.f32.mrb[44].mxu0 }
 0xb56   : > { %v3454_v46 = vpop.f32.mrb[45].mxu0 }
 0xb57   : > { %v3455_v50 = vadd.f32 %v3454_v46, %v3453_v48  ;;  %v3456_v4 = vpop.f32.mrb[46].mxu0 }
 0xb58   : > { %v3457_v52 = vpop.f32.mrb[47].mxu0 }
 0xb59   : > { %v3458_v57 = vadd.f32 %v3457_v52, %v3456_v4  ;;  %v2666_v1 = vadd.f32 %v3455_v50, %v3321_v58 }
 0xb5b   : > { %v2669_v2 = vadd.f32 %v3458_v57, %v3321_v58 }
 0xc10   : > { %v3475_v63 = vpop.f32.mrb[44].mxu1 }
 0xc11   : > { %v3476_v3 = vpop.f32.mrb[45].mxu1 }
 0xc12   : > { %v3477_v7 = vadd.f32 %v3476_v3, %v3475_v63  ;;  %v3478_v19 = vpop.f32.mrb[46].mxu1 }
 0xc13   : > { %v3479_v38 = vpop.f32.mrb[47].mxu1 }
 0xc14   : > { %v2707_v8 = vadd.f32 %v3477_v7, %v2666_v1  ;;  %v3480_v9 = vadd.f32 %v3479_v38, %v3478_v19 }
 0xc16   : > { %v2710_v10 = vadd.f32 %v3480_v9, %v2669_v2  ;;  %v2713_v13 = vadd.f32 %v3765_v12, %v2707_v8 }
 0xc18   : > { %v2717_v15 = vsel %vm1072_vm4, %v2713_v13, 0.0  ;;  %v2714_v18 = vadd.f32 %v3766_v17, %v2710_v10 }
 0xc19   : > { %2718 = vadd.xlane.f32.xlu0 %v2717_v15 }
 0xc1a   : > { %v2720_v20 = vsel %vm1072_vm4, %v2714_v18, 0.0 }
 0xc1b   : > { %2721 = vadd.xlane.f32.xlu1 %v2720_v20 }
 0xca6   : > { %v2719_v21 = vpop.xlane.xlu0 %2718 }
 0xca7   : > { %v2724_v22 = vmul.f32 0.03125, %v2719_v21 }
 0xca8   : > { %v2722_v23 = vpop.xlane.xlu1 %2721 }
 0xca9   : > { %v2726_v24 = vsub.f32 %v2713_v13, %v2724_v22  ;;  %v2725_v25 = vmul.f32 0.03125, %v2722_v23 }
 0xcab   : > { %v2727_v26 = vsub.f32 %v2714_v18, %v2725_v25  ;;  %v2728_v27 = vmul.f32 %v2726_v24, %v2726_v24 }
 0xcad   : > { %v2730_v28 = vsel %vm1072_vm4, %v2728_v27, 0.0  ;;  %v2729_v29 = vmul.f32 %v2727_v26, %v2727_v26 }
 0xcae   : > { %2731 = vadd.xlane.f32.xlu0 %v2730_v28  ;;  %v3366_v28 = vld [vmem:[%s922_s30] ss:$0 sm:$0xff] }
 0xcaf   : > { %v2733_v16 = vsel %vm1072_vm4, %v2729_v29, 0.0 }
 0xcb0   : > { %2734 = vadd.xlane.f32.xlu1 %v2733_v16 }
 0xd3b   : > { %v2732_v32 = vpop.xlane.xlu0 %2731 }
 0xd3c   : > { %v2736_v33 = vmul.f32 0.03125, %v2732_v32 }
 0xd3d   : > { %v2735_v34 = vpop.xlane.xlu1 %2734 }
 0xd3e   : > { %v2738_v47 = vadd.f32 1e-05, %v2736_v33  ;;  %v2737_v54 = vmul.f32 0.03125, %v2735_v34  ;;  %v2967_v34 = vld [vmem:[%s4490_s20] sm:$0xff] (!%p3368_p6) }
 0xd40   : > { %3757 = vrsqrt.f32 %v2738_v47  ;;  %v2739_v0 = vadd.f32 1e-05, %v2737_v54  ;;  %v3827_v47 = vmov (!%p3368_p6), 0   ;;  %v2968_v54 = vld [vmem:[%s4490_s20 + $0x8] sm:$0xff] (!%p3368_p6) }
 0xd41   : > { %3767 = vset.pattern.permute.xlu0 (!%p3368_p6), %v3827_v47 }
 0xd42   : > { %3759 = vrsqrt.f32 %v2739_v0 }
 0xd4a   : > { %v3758_v14 = vpop.eup %3757 }
 0xd4b   : > { %v2742_v35 = vmul.f32 %v3758_v14, %v2726_v24 }
 0xd4c   : > { %v3760_v36 = vpop.eup %3759 }
 0xd4d   : > { %v2750_v37 = vmul.f32 %v3354_v60, %v2742_v35  ;;  %v2743_v40 = vmul.f32 %v3760_v36, %v2727_v26 }
 0xd4f   : > { %v2751_v59 = vmul.f32 %v3354_v60, %v2743_v40  ;;  %v2758_v53 = vadd.f32 %v3355_v41, %v2750_v37 }
 0xd51   : > { %v2759_v11 = vadd.f32 %v3355_v41, %v2751_v59 }
 0xd53   : > { %v2760_v5 = vpack.c.bf16 %v2759_v11, %v2758_v53 }
 0xd55   : > { %3596 = vmatmul.mubr.msk.bf16.vlgmr.msra.gmra.mrb[48].mxu0 %vm1072_vm4, %v2760_v5 }
 0xe28   : > { %v2821_v49 = vpop.f32.mrb[48].mxu0 }
 0xe29   : > { %v2822_v6 = vadd.f32 %v3356_v44, %v2821_v49  ;;  %v3597_v51 = vpop.f32.mrb[49].mxu0 }
 0xe2a   : > { %v2824_v55 = vpop.f32.mrb[50].mxu0 }
 0xe2b   : > { %v2825_v43 = vadd.f32 %v3356_v44, %v2824_v55  ;;  %v3598_v45 = vpop.f32.mrb[51].mxu0  ;;  %v2828_v48 = vmax.f32 %v2822_v6, 0.0 }
 0xe2d   : > { %v2829_v46 = vmax.f32 %v2825_v43, 0.0 }
 0xe2f   : > { %v2830_v50 = vpack.c.bf16 %v2829_v46, %v2828_v48 }
 0xe31   : > { %3608 = vmatmul.mubr.msk.bf16.vlgmr.msra.gmra.mrb[48].mxu1 %vm2870_vm8, %v2830_v50 }
 0xf04   : > { %v2908_v4 = vpop.f32.mrb[48].mxu1 }
 0xf05   : > { %v2909_v52 = vadd.f32 %v3360_v39, %v2908_v4  ;;  %v3609_v57 = vpop.f32.mrb[49].mxu1 }
 0xf06   : > { %v2911_v58 = vpop.f32.mrb[50].mxu1 }
 0xf07   : > { %v2912_v63 = vadd.f32 %v3360_v39, %v2911_v58  ;;  %v3610_v3 = vpop.f32.mrb[51].mxu1  ;;  %v2915_v1 = vadd.f32 %v2909_v52, %v2758_v53 }
 0xf09   : > { %v2919_v7 = vsel %vm1072_vm4, %v2915_v1, 0.0  ;;  %v2916_v19 = vadd.f32 %v2912_v63, %v2759_v11 }
 0xf0a   : > { %2920 = vadd.xlane.f32.xlu0 %v2919_v7 }
 0xf0b   : > { %v2922_v38 = vsel %vm1072_vm4, %v2916_v19, 0.0 }
 0xf0c   : > { %2923 = vadd.xlane.f32.xlu1 %v2922_v38 }
 0xf97   : > { %v2921_v2 = vpop.xlane.xlu0 %2920 }
 0xf98   : > { %v2925_v8 = vmul.f32 0.03125, %v2921_v2 }
 0xf99   : > { %v2924_v9 = vpop.xlane.xlu1 %2923 }
 0xf9a   : > { %v2927_v10 = vsub.f32 %v2915_v1, %v2925_v8  ;;  %v2926_v12 = vmul.f32 0.03125, %v2924_v9 }
 0xf9c   : > { %v2928_v13 = vsub.f32 %v2916_v19, %v2926_v12  ;;  %v2929_v15 = vmul.f32 %v2927_v10, %v2927_v10 }
 0xf9e   : > { %v2931_v17 = vsel %vm1072_vm4, %v2929_v15, 0.0  ;;  %v2930_v18 = vmul.f32 %v2928_v13, %v2928_v13 }
 0xf9f   : > { %2932 = vadd.xlane.f32.xlu0 %v2931_v17 }
 0xfa0   : > { %v2934_v20 = vsel %vm1072_vm4, %v2930_v18, 0.0 }
 0xfa1   : > { %2935 = vadd.xlane.f32.xlu1 %v2934_v20 }
 0xfb5   : > { %2971 = vperm.xlu0 (!%p3368_p6), %3767, %v2967_v34  }
 0xfb9   : > { %2976 = vperm.xlu0 (!%p3368_p6), %3767, %v2968_v54  }
0x102c   : > { %v2933_v21 = vpop.xlane.xlu0 %2932 }
0x102d   : > { %v2937_v22 = vmul.f32 0.03125, %v2933_v21 }
0x102e   : > { %v2936_v23 = vpop.xlane.xlu1 %2935 }
0x102f   : > { %v2939_v24 = vadd.f32 1e-05, %v2937_v22  ;;  %v2938_v25 = vmul.f32 0.03125, %v2936_v23 }
0x1031   : > { %3761 = vrsqrt.f32 %v2939_v24  ;;  %v2940_v26 = vadd.f32 1e-05, %v2938_v25 }
0x1033   : > { %3763 = vrsqrt.f32 %v2940_v26 }
0x1034   : > { %v2972_v0 = vpop.permute.xlu0 (!%p3368_p6), %2971 }
0x1038   : > { %v2977_v60 = vpop.permute.xlu0 (!%p3368_p6), %2976 }
0x103b   : > { %v3762_v27 = vpop.eup %3761 }
0x103c   : > { %v2943_v29 = vmul.f32 %v3762_v27, %v2927_v10 }
0x103d   : > { %v3764_v16 = vpop.eup %3763 }
0x103e   : > { %v2951_v62 = vmul.f32 %v3366_v28, %v2943_v29  ;;  %v2944_v30 = vmul.f32 %v3764_v16, %v2928_v13  ;;  %2966 = sbr.rel (%p3368_p6) target bundleno = 4167 (0x1047), region = 108 }
0x1040   : > { %v2959_v31 = vadd.f32 %v3367_v61, %v2951_v62  ;;  %v2952_v32 = vmul.f32 %v3366_v28, %v2944_v30 }
0x1042   : > { %2961 = vst.msk [vmem:[#allocation2] sm:$0xff] %vm1072_vm4, %v2959_v31  ;;  %v2960_v33 = vadd.f32 %v3367_v61, %v2952_v32  ;;  %v2979_v14 = vmul.f32 (!%p3368_p6), %v2972_v0, %v2959_v31 }
0x1044   : > { %2962 = vst.msk [vmem:[#allocation2 + $0x8] sm:$0xff] %vm1072_vm4, %v2960_v33  ;;  %2981 = vst.msk [vmem:[#allocation4] sm:$0xff] (!%p3368_p6), %vm1072_vm4, %v2979_v14  ;;  %v2980_v35 = vmul.f32 (!%p3368_p6), %v2977_v60, %v2960_v33 }
0x1046   : > { %2982 = vst.msk [vmem:[#allocation4 + $0x8] sm:$0xff] %vm1072_vm4, %v2980_v35 }
0x1047 PF: > { %s4491_s10 = sld [smem:[#allocation9_spill]]  ;;  %s3828_s23 = smov [#allocation4]  }
0x1048   : > { %s2992_s5 = sshll.u32 %s3828_s23, 4  ;;  %s2993_s5 = int_to_ptr.vmem [resolvable:$true] %s2992_s5 }
0x1049   : > { %s3768_s22 = scalar_lea.vmem %s2993_s5, 256  ;;  %p3775_p11 = scmp.lt.s32.totalorder %s2993_s5, %s2993_s5 }
0x104a   : > { %p3769_p8 = scmp.ne.s32.totalorder %s2993_s5, %s3768_s22  ;;  %p3776_p12 = scmp.lt.s32.totalorder %s3768_s22, %s3768_s22 }
0x104c   : > { %p3777_p13 = por %p3776_p12, %p3775_p11 }
0x104d   : > { %s4492_s9 = sadd.s32 4294967295, %s4491_s10  }
0x104e   : > { %p4386_p7 = scmp.eq.s32.totalorder %s4492_s9, 1 }
0x1050   : > { %p3770_p9 = pnand %p3769_p8, %p4386_p7 }
0x1052   : > { %p3771_p10 = pneg %p3770_p9 }
0x1054   : > { %p3778_p0 = pnand %p3777_p13, %p3771_p10 }
0x1056   : > { %3781 = shalt.err (!%p3778_p0)
}
0x1057   : > { %s4494_s19 = sld [smem:[#allocation24_spill]] }
0x105d   : > { %s3782_s29 = scalar_lea.hbm %s4494_s19, 256 }
0x105e   : > { %p3783_p1 = scmp.ne.s32.totalorder %s4494_s19, %s3782_s29  ;;  %p3788_p4 = scmp.lt.u32.totalorder %s3782_s29, %s4494_s19 }
0x1060   : > { %p3784_p2 = pnand %p3783_p1, %p4386_p7 }
0x1062   : > { %p3785_p3 = pneg %p3784_p2 }
0x1064   : > { %p3790_p5 = pnand %p3788_p4, %p3785_p3 }
0x1066   : > { %3793 = shalt.err (!%p3790_p5)
}
0x1067   : > { %s3829_s2 = smov 128   ;;  %s3830_s1 = smov 8  }
0x1068   : > { %3612 = dma.vmem_to_hbm [thread:$0]  (%p4386_p7), %s2993_s5, 256, %s4494_s19, [#allocation5], %s3829_s2, %s3829_s2, %s3830_s1  }
0x1069   : > { %3807 = dma.done.wait (%p4386_p7), [#allocation5], 256  }
0x106a   : > { %3809 = vsyncadd (%p4386_p7), [#allocation5], 4294967040 }
0x106b PF: > { %s4495_s30 = sld [smem:[#allocation9_spill]]  ;;  %s4496_s1 = sld [smem:[#allocation8_spill]] }
0x106c   : > { %s4497_s22 = sld [smem:[#allocation10_spill]] }
0x1071   : > { %s31_s23 = sadd.s32 1, %s4495_s30  }
0x1072   : > { %p28_p6 = scmp.ge.s32.totalorder %s31_s23, 4  }
0x1074   :  { %30 = sbr.rel (!%p28_p6) target bundleno = 16 (0x10), region = 187 }
0x107b   :  { %3008 = vsyncpa [#allocation5], 1 }
0x107c   :  { %3010 = vsyncpa [#allocation5 + $0x1], 1 }

</bundles_post_ra>
